<compile_context>
chip_gen: v7x
topology: tpu7x:2x2x1
jax: 0.10.0
libtpu: 0.0.40
codegen_flags: <defaults>
</compile_context>

<pallas_src>
import jax
import jax.numpy as jnp
from jax.experimental import pallas as pl
from jax.experimental.pallas import tpu as pltpu

# ----- sizes (consistent with the module's forward) -----
C, H, W = 3, 16, 16          # raw obs channels / spatial
OUT_HW = 64                  # F.interpolate(..., (64, 64), mode='nearest')
PATCH = 8
GRID_HW = OUT_HW // PATCH            # 8
NUM_PATCHES = GRID_HW * GRID_HW      # 64
UPS = OUT_HW // H                    # 4   nearest-upsample factor (folded away)
SRC_PP = PATCH // UPS                # 2   unique source rows/cols per patch
SRC_PATCH_DIM = C * SRC_PP * SRC_PP  # 12  unique source pixels per patch
PATCH_DIM = C * PATCH * PATCH        # 192 rows of the un-folded patch weight
HIDDEN = 128
NUM_SLOTS = 8
SLOT_SIZE = 32                       # embed_size = NUM_SLOTS * SLOT_SIZE = 256
EMBED = NUM_SLOTS * SLOT_SIZE
MAX_FRAMES_PER_BLOCK = 64            # ~12 MiB worst-case live VMEM at f=64


def _savi_slot_kernel(x_ref, wenc_ref, benc_ref, wq_ref, wout_ref, bout_ref,
                      o_ref):
    f = x_ref.shape[0]

    # Patch embedding.  Upsample replication and the 2*x-1 affine are already
    # folded into (wenc, benc), so raw bf16 pixels go straight to the MXU.
    x2 = x_ref[...].reshape(f * NUM_PATCHES, SRC_PATCH_DIM)            # bf16
    h = jnp.dot(x2, wenc_ref[...], preferred_element_type=jnp.float32)
    h = jnp.maximum(h + benc_ref[...], 0.0)                            # [f*64,128] f32
    hb = h.astype(jnp.bfloat16)

    # Slot logits and value projection off the same big-M operand.
    # hv = h @ wout hoisted out of the per-frame contraction (associativity),
    # so the f-batched matmul below has N=32 and the tiny second projection
    # matmul disappears.
    logits = jnp.dot(hb, wq_ref[...], preferred_element_type=jnp.float32)   # [f*64, 8]
    hv = jnp.dot(hb, wout_ref[...], preferred_element_type=jnp.float32)     # [f*64, 32]

    # Softmax over patches in slot-major [f, 8, 64] layout: patches sit on the
    # 128-lane axis, so max/exp/sum/reciprocal are lane-dense.
    lt = jnp.transpose(logits.reshape(f, NUM_PATCHES, NUM_SLOTS), (0, 2, 1))
    lt = lt - jnp.max(lt, axis=-1, keepdims=True)
    e = jnp.exp(lt)
    attn = e * pl.reciprocal(jnp.sum(e, axis=-1, keepdims=True), approx=True)

    # Slot readout: attn [f,8,64] @ hv [f,64,32], bias, tanh.
    hv3 = hv.reshape(f, NUM_PATCHES, SLOT_SIZE).astype(jnp.bfloat16)
    slots = jnp.einsum('fsp,fpv->fsv', attn.astype(jnp.bfloat16), hv3,
                       preferred_element_type=jnp.float32)              # [f,8,32]
    out = jnp.tanh(slots + bout_ref[...].reshape(1, 1, SLOT_SIZE))

    # Lane-dense store: one contiguous 256-wide row per frame (unmasked vst).
    o_ref[...] = out.reshape(f, EMBED).astype(o_ref.dtype)


def savi_slots_pallas(x_patches, params):
    """x_patches: [N, NUM_PATCHES, SRC_PATCH_DIM] bf16 raw pixels in [0,1]
       -> [N, EMBED] f32 slot embedding (already flattened, lane-dense)."""
    wenc, benc, wq, wout, bout = params
    n = x_patches.shape[0]

    # Frames per grid step: as many as comfortably fit in VMEM (amortize the
    # ~0.35us/step grid overhead), an EVEN number of steps (v7x splits the
    # single parallel axis across its two TensorCores), and f a multiple of 8
    # so the (f, EMBED) output block is fully sublane-aligned.
    steps = max(2, pl.cdiv(n, MAX_FRAMES_PER_BLOCK))
    if steps % 2:
        steps += 1
    f = 8 * pl.cdiv(pl.cdiv(n, steps), 8)
    n_pad = steps * f

    x = jnp.pad(x_patches, ((0, n_pad - n), (0, 0), (0, 0)))

    out = pl.pallas_call(
        _savi_slot_kernel,
        out_shape=jax.ShapeDtypeStruct((n_pad, EMBED), jnp.float32),
        grid_spec=pltpu.PrefetchScalarGridSpec(
            num_scalar_prefetch=0,
            grid=(steps,),
            in_specs=[
                pl.BlockSpec((f, NUM_PATCHES, SRC_PATCH_DIM),
                             lambda i: (i, 0, 0)),
                pl.BlockSpec((SRC_PATCH_DIM, HIDDEN), lambda i: (0, 0)),
                pl.BlockSpec((1, HIDDEN), lambda i: (0, 0)),
                pl.BlockSpec((HIDDEN, NUM_SLOTS), lambda i: (0, 0)),
                pl.BlockSpec((HIDDEN, SLOT_SIZE), lambda i: (0, 0)),
                pl.BlockSpec((1, SLOT_SIZE), lambda i: (0, 0)),
            ],
            out_specs=pl.BlockSpec((f, EMBED), lambda i: (i, 0)),
        ),
        compiler_params=pltpu.CompilerParams(
            dimension_semantics=("parallel",),
            vmem_limit_bytes=32 * 1024 * 1024),
    )(x, wenc, benc, wq, wout, bout)
    return out[:n]


def slot_obs_encoder_forward(obs, params):
    """obs: [T, B, C, H, W] in [0, 1]  ->  embed: [T, B, NUM_SLOTS*SLOT_SIZE]"""
    t, b, c, h, w = obs.shape
    assert (c, h, w) == (C, H, W), "upsample fold assumes 3x16x16 input frames"
    n = t * b

    # clamp(2x-1,-1,1) == 2*clamp(x,0,1)-1 and the nearest 16->64 upsample are
    # both folded into the encoder weights, so the host glue is a single fused
    # clip -> bf16 -> layout producer (no 64x64 f32 intermediate in HBM).
    # Source pixel (hi, wi) with hi = gi*2+si lands only in patch (gi, gj) at
    # intra-patch fold index (c, si, sj).
    x = jnp.clip(obs, 0.0, 1.0).astype(jnp.bfloat16)
    x = x.reshape(n, C, GRID_HW, SRC_PP, GRID_HW, SRC_PP)
    x = x.transpose(0, 2, 4, 1, 3, 5).reshape(n, NUM_PATCHES, SRC_PATCH_DIM)

    slots = savi_slots_pallas(x, params)                 # [n, 256]

    # The module's [T,B]<->[B,T] transposes around the per-frame SAVi call
    # cancel; flatten(2,3) is already the lane-dense 256 layout produced above.
    return slots.reshape(t, b, EMBED)


def fold_encoder_params(wenc_patch, benc, wq, wout, bout):
    """Exact algebraic folds (no approximation):
       (a) nearest 16->64 upsample: sum the 4x4-replicated rows of the 192-row
           patch-embedding weight -> 12 rows.
       (b) 2*x-1 affine: dot(2x-1, W) + b == dot(x, 2W) + (b - sum_k W[k])."""
    w = wenc_patch.reshape(C, SRC_PP, UPS, SRC_PP, UPS, HIDDEN)   # (c,si,ri,sj,rj,h)
    w_up = w.sum(axis=(2, 4)).reshape(SRC_PATCH_DIM, HIDDEN)      # f32 [12, 128]
    wenc_f = (2.0 * w_up).astype(jnp.bfloat16)
    benc_f = (benc.reshape(1, HIDDEN)
              - w_up.sum(axis=0, keepdims=True)).astype(jnp.float32)
    return (wenc_f, benc_f,
            wq.astype(jnp.bfloat16), wout.astype(jnp.bfloat16),
            bout.reshape(1, SLOT_SIZE).astype(jnp.float32))


def make_params():
    """Deterministic synthetic weights in the original (unfolded) layout,
    then folded for the kernel."""
    k1, k2, k3 = jax.random.split(jax.random.PRNGKey(42), 3)
    wenc = jax.random.normal(k1, (PATCH_DIM, HIDDEN), jnp.float32) * 0.05
    benc = jnp.zeros((HIDDEN,), jnp.float32)
    wq = jax.random.normal(k2, (HIDDEN, NUM_SLOTS), jnp.float32) * 0.05
    wout = jax.random.normal(k3, (HIDDEN, SLOT_SIZE), jnp.float32) * 0.05
    bout = jnp.zeros((SLOT_SIZE,), jnp.float32)
    return fold_encoder_params(wenc, benc, wq, wout, bout)


if __name__ == "__main__":
    T, B = 2, 2
    obs = jax.random.uniform(jax.random.PRNGKey(0), (T, B, C, H, W),
                             dtype=jnp.float32)
    params = make_params()

    fwd = jax.jit(lambda o: slot_obs_encoder_forward(o, params))
    embed = fwd(obs)
    jax.block_until_ready(embed)

    assert embed.shape == (T, B, EMBED), embed.shape
    assert embed.dtype == jnp.float32
    assert bool(jnp.all(jnp.isfinite(embed)))
    print("KERNEL_OK")
</pallas_src>

<mosaic_0001>
module attributes {stable_mosaic.version = 11 : i64} {
  func.func @_savi_slot_kernel(%arg0: i32, %arg1: memref<8x64x12xbf16, #tpu.memory_space<vmem>>, %arg2: memref<12x128xbf16, #tpu.memory_space<vmem>>, %arg3: memref<1x128xf32, #tpu.memory_space<vmem>>, %arg4: memref<128x8xbf16, #tpu.memory_space<vmem>>, %arg5: memref<128x32xbf16, #tpu.memory_space<vmem>>, %arg6: memref<1x32xf32, #tpu.memory_space<vmem>>, %arg7: memref<8x256xf32, #tpu.memory_space<vmem>>) attributes {dimension_semantics = [#tpu.dimension_semantics<parallel>], iteration_bounds = array<i64: 2>, scalar_prefetch = 0 : i64, scratch_operands = 0 : i64, tpu.core_type = #tpu.core_type<tc>, window_params = [{transform_indices = @transform_0, window_bounds = array<i64: 8, 64, 12>}, {pipeline_mode = #tpu.pipeline_mode<synchronous>, transform_indices = @transform_1, window_bounds = array<i64: 12, 128>}, {pipeline_mode = #tpu.pipeline_mode<synchronous>, transform_indices = @transform_2, window_bounds = array<i64: 1, 128>}, {pipeline_mode = #tpu.pipeline_mode<synchronous>, transform_indices = @transform_3, window_bounds = array<i64: 128, 8>}, {pipeline_mode = #tpu.pipeline_mode<synchronous>, transform_indices = @transform_4, window_bounds = array<i64: 128, 32>}, {pipeline_mode = #tpu.pipeline_mode<synchronous>, transform_indices = @transform_5, window_bounds = array<i64: 1, 32>}, {transform_indices = @transform_6, window_bounds = array<i64: 8, 256>}]} {
    %c0 = arith.constant 0 : index
    %c0_0 = arith.constant 0 : index
    %c0_1 = arith.constant 0 : index
    %0 = vector.load %arg1[%c0, %c0_0, %c0_1] : memref<8x64x12xbf16, #tpu.memory_space<vmem>>, vector<8x64x12xbf16>
    %1 = vector.shape_cast %0 : vector<8x64x12xbf16> to vector<512x12xbf16>
    %c0_2 = arith.constant 0 : index
    %c0_3 = arith.constant 0 : index
    %2 = vector.load %arg2[%c0_2, %c0_3] : memref<12x128xbf16, #tpu.memory_space<vmem>>, vector<12x128xbf16>
    %cst = arith.constant dense<0.000000e+00> : vector<512x128xf32>
    %3 = tpu.matmul %1, %2, %cst {dimension_numbers = #tpu.dot_dimension_numbers<[1], [0], [0], [1], [0, 0, 1, 1], [], []>} : vector<512x12xbf16>, vector<12x128xbf16>, vector<512x128xf32> -> vector<512x128xf32>
    %c0_4 = arith.constant 0 : index
    %c0_5 = arith.constant 0 : index
    %4 = vector.load %arg3[%c0_4, %c0_5] : memref<1x128xf32, #tpu.memory_space<vmem>>, vector<1x128xf32>
    %5 = vector.broadcast %4 : vector<1x128xf32> to vector<512x128xf32>
    %6 = arith.addf %3, %5 : vector<512x128xf32>
    %cst_6 = arith.constant 0.000000e+00 : f32
    %7 = vector.broadcast %cst_6 : f32 to vector<512x128xf32>
    %8 = arith.maximumf %6, %7 : vector<512x128xf32>
    %9 = arith.truncf %8 : vector<512x128xf32> to vector<512x128xbf16>
    %c0_7 = arith.constant 0 : index
    %c0_8 = arith.constant 0 : index
    %10 = vector.load %arg4[%c0_7, %c0_8] : memref<128x8xbf16, #tpu.memory_space<vmem>>, vector<128x8xbf16>
    %cst_9 = arith.constant dense<0.000000e+00> : vector<512x8xf32>
    %11 = tpu.matmul %9, %10, %cst_9 {dimension_numbers = #tpu.dot_dimension_numbers<[1], [0], [0], [1], [0, 0, 1, 1], [], []>} : vector<512x128xbf16>, vector<128x8xbf16>, vector<512x8xf32> -> vector<512x8xf32>
    %c0_10 = arith.constant 0 : index
    %c0_11 = arith.constant 0 : index
    %12 = vector.load %arg5[%c0_10, %c0_11] : memref<128x32xbf16, #tpu.memory_space<vmem>>, vector<128x32xbf16>
    %cst_12 = arith.constant dense<0.000000e+00> : vector<512x32xf32>
    %13 = tpu.matmul %9, %12, %cst_12 {dimension_numbers = #tpu.dot_dimension_numbers<[1], [0], [0], [1], [0, 0, 1, 1], [], []>} : vector<512x128xbf16>, vector<128x32xbf16>, vector<512x32xf32> -> vector<512x32xf32>
    %14 = vector.shape_cast %11 : vector<512x8xf32> to vector<8x64x8xf32>
    %15 = tpu.transpose %14, [0, 2, 1] : vector<8x64x8xf32> -> vector<8x8x64xf32>
    %cst_13 = arith.constant dense<0xFF800000> : vector<8x8xf32>
    %16 = vector.multi_reduction <maximumf>, %15, %cst_13 [2] : vector<8x8x64xf32> to vector<8x8xf32>
    %17 = vector.shape_cast %16 : vector<8x8xf32> to vector<8x8x1xf32>
    %18 = vector.broadcast %17 : vector<8x8x1xf32> to vector<8x8x64xf32>
    %19 = arith.subf %15, %18 : vector<8x8x64xf32>
    %20 = math.exp %19 : vector<8x8x64xf32>
    %cst_14 = arith.constant dense<0.000000e+00> : vector<8x8xf32>
    %21 = vector.multi_reduction <add>, %20, %cst_14 [2] : vector<8x8x64xf32> to vector<8x8xf32>
    %22 = vector.shape_cast %21 : vector<8x8xf32> to vector<8x8x1xf32>
    %23 = tpu.reciprocal %22 {approx = true} : vector<8x8x1xf32> -> vector<8x8x1xf32>
    %24 = vector.broadcast %23 : vector<8x8x1xf32> to vector<8x8x64xf32>
    %25 = arith.mulf %20, %24 : vector<8x8x64xf32>
    %26 = vector.shape_cast %13 : vector<512x32xf32> to vector<8x64x32xf32>
    %27 = arith.truncf %26 : vector<8x64x32xf32> to vector<8x64x32xbf16>
    %28 = arith.truncf %25 : vector<8x8x64xf32> to vector<8x8x64xbf16>
    "tpu.trace_start"() <{level = 10 : i32, message = "fsp,fpv->fsv"}> : () -> ()
    %cst_15 = arith.constant dense<0.000000e+00> : vector<8x8x32xf32>
    %29 = tpu.matmul %28, %27, %cst_15 {dimension_numbers = #tpu.dot_dimension_numbers<[2], [1], [1], [2], [0, 0, 0, 1, 1, 2], [0], [0]>} : vector<8x8x64xbf16>, vector<8x64x32xbf16>, vector<8x8x32xf32> -> vector<8x8x32xf32>
    "tpu.trace_stop"() : () -> ()
    %c0_16 = arith.constant 0 : index
    %c0_17 = arith.constant 0 : index
    %30 = vector.load %arg6[%c0_16, %c0_17] : memref<1x32xf32, #tpu.memory_space<vmem>>, vector<1x32xf32>
    %31 = vector.shape_cast %30 : vector<1x32xf32> to vector<1x1x32xf32>
    %32 = vector.broadcast %31 : vector<1x1x32xf32> to vector<8x8x32xf32>
    %33 = arith.addf %29, %32 : vector<8x8x32xf32>
    %34 = math.tanh %33 : vector<8x8x32xf32>
    %35 = vector.shape_cast %34 : vector<8x8x32xf32> to vector<8x256xf32>
    %c0_18 = arith.constant 0 : index
    %c0_19 = arith.constant 0 : index
    %36 = vector.load %arg7[%c0_18, %c0_19] : memref<8x256xf32, #tpu.memory_space<vmem>>, vector<8x256xf32>
    tpu.vector_store %arg7[%c0_18, %c0_19], %35 {strides = array<i32>} : memref<8x256xf32, #tpu.memory_space<vmem>>, vector<8x256xf32>,
    return
  }
  func.func @transform_0(%arg0: i32) -> (i32, i32, i32) {
    %c0_i32 = arith.constant 0 : i32
    %c0_i32_0 = arith.constant 0 : i32
    %c0_i32_1 = arith.constant 0 : i32
    return %arg0, %c0_i32, %c0_i32_0 : i32, i32, i32
  }
  func.func @transform_1(%arg0: i32) -> (i32, i32) {
    %c0_i32 = arith.constant 0 : i32
    %c0_i32_0 = arith.constant 0 : i32
    %c0_i32_1 = arith.constant 0 : i32
    return %c0_i32, %c0_i32_0 : i32, i32
  }
  func.func @transform_2(%arg0: i32) -> (i32, i32) {
    %c0_i32 = arith.constant 0 : i32
    %c0_i32_0 = arith.constant 0 : i32
    %c0_i32_1 = arith.constant 0 : i32
    return %c0_i32, %c0_i32_0 : i32, i32
  }
  func.func @transform_3(%arg0: i32) -> (i32, i32) {
    %c0_i32 = arith.constant 0 : i32
    %c0_i32_0 = arith.constant 0 : i32
    %c0_i32_1 = arith.constant 0 : i32
    return %c0_i32, %c0_i32_0 : i32, i32
  }
  func.func @transform_4(%arg0: i32) -> (i32, i32) {
    %c0_i32 = arith.constant 0 : i32
    %c0_i32_0 = arith.constant 0 : i32
    %c0_i32_1 = arith.constant 0 : i32
    return %c0_i32, %c0_i32_0 : i32, i32
  }
  func.func @transform_5(%arg0: i32) -> (i32, i32) {
    %c0_i32 = arith.constant 0 : i32
    %c0_i32_0 = arith.constant 0 : i32
    %c0_i32_1 = arith.constant 0 : i32
    return %c0_i32, %c0_i32_0 : i32, i32
  }
  func.func @transform_6(%arg0: i32) -> (i32, i32) {
    %c0_i32 = arith.constant 0 : i32
    %c0_i32_0 = arith.constant 0 : i32
    return %arg0, %c0_i32 : i32, i32
  }
}

</mosaic_0001>

<bundles_post_ra>
// kernel: _lambda_.1
= control target key start
LH: loop header
LB: loop body
LE: loop exit
PB: predicated region body
PF: predicated region fallthrough
CT: control target
= control target key end

     0   :  { %s3400_s21 = smov 0   ;;  %s3946_s0 = inlined_call_operand.vmem [shape: bf16[16,64,12], index: 0, kind: input, shape index: {}]   ;;  %s3947_s1 = inlined_call_operand.vmem [shape: bf16[12,128], index: 1, kind: input, shape index: {}]   ;;  %s3948_s2 = inlined_call_operand.vmem [shape: f32[1,128], index: 2, kind: input, shape index: {}]   ;;  %s3949_s3 = inlined_call_operand.vmem [shape: bf16[128,8], index: 3, kind: input, shape index: {}]   ;;  %s3950_s4 = inlined_call_operand.vmem [shape: bf16[128,32], index: 4, kind: input, shape index: {}]   ;;  %s3951_s5 = inlined_call_operand.vmem [shape: f32[1,32], index: 5, kind: input, shape index: {}]   ;;  %s3952_s6 = inlined_call_operand.vmem [shape: f32[16,256], index: 6, kind: output, shape index: {}]  }
   0x1 LB: > { %s3406_s22 = sadd.s32 4294967295, %s3356_s21   ;;  %p2661_p0 = scmp.ge.s32.totalorder %s3356_s21, 1  ;;  %s3356_s21 = sphi %s3400_s21, %s16_s21  }
   0x2   : > { %p214_p1 = scmp.lt.s32.totalorder %s3356_s21, 3 }
   0x4   : > { %p215_p2 = pnand %p2661_p0, %p214_p1 }
   0x6   : > { %218 = sbr.rel (%p215_p2) target bundleno = 1514 (0x5ea), region = 44 }
   0xd   : > { %v3253_v0 = vld [vmem:[%s3947_s1] sm:$0x3f]   ;;  %vm593_vm0 = vcmask 1045504   ;;  %s2662_s25 = sshll.u32 %s3406_s22, 3  ;;  %v3282_v4 = vld [vmem:[%s3949_s3 + $0x8] sm:$0xff]   ;;  %v3286_v5 = vld [vmem:[%s3949_s3 + $0x10] sm:$0xff]  }
   0xe   : > { %v3280_v1 = vld [vmem:[%s3949_s3] sm:$0xff]   ;;  %3237 = vmatprep.subr.msk.bf16.mxu0 %vm593_vm0, %v3253_v0  ;;  %v595_v2 = vsel %vm593_vm0, %v3253_v0, 0  ;;  %p246_p3 = scmp.lt.s32.totalorder %s2662_s25, 15  ;;  %vm496_vm1 = vcmask 97280   ;;  %v3283_v6 = vld [vmem:[%s3950_s4 + $0x8] sm:$0xff]   ;;  %v3287_v10 = vld [vmem:[%s3950_s4 + $0x10] sm:$0xff]  }
   0xf   : > { %2916 = vmatpush3.bf16.msra.mxu0 %v595_v2  ;;  %2981 = vmatprep.subr.bf16.mxu1 %v3280_v1  ;;  %v3281_v3 = vld [vmem:[%s3950_s4] sm:$0xff]   ;;  %v3288_v17 = vld [vmem:[%s3949_s3 + $0x18] sm:$0xff]   ;;  %v3294_v23 = vld [vmem:[%s3949_s3 + $0x28] sm:$0xff]   ;;  %vm1944_vm2 = vcmask 523264   ;;  %vm3359_vm3 = vmmov 0   ;;  %s3362_s20 = smov 32  }
  0x10   : > { %s4023_s25 = smov (!%p246_p3, %s2662_s25), 15  ;;  %2982 = vmatpush3.bf16.msra.mxu1 %v3280_v1  ;;  %3061 = vmatprep.subr.bf16.mxu0 %v3281_v3  ;;  %v3289_v18 = vld [vmem:[%s3950_s4 + $0x18] sm:$0xff]   ;;  %v3292_v21 = vld [vmem:[%s3949_s3 + $0x20] sm:$0xff]   ;;  %v3295_v24 = vld [vmem:[%s3950_s4 + $0x28] sm:$0xff]   ;;  %s3363_s23 = smov 96   ;;  %vm2592_vm4 = vcmask 261120  }
  0x11   : > { %s2760_s8 = sshll.u32 %s4023_s25, 5  ;;  %2983 = vmatprep.subr.bf16.mxu1 %v3282_v4  ;;  %v3293_v22 = vld [vmem:[%s3950_s4 + $0x20] sm:$0xff]   ;;  %v3298_v38 = vld [vmem:[%s3949_s3 + $0x30] sm:$0xff]   ;;  %v3300_v41 = vld [vmem:[%s3949_s3 + $0x38] sm:$0xff]   ;;  %s3364_s24 = smov 64   ;;  %vm2595_vm5 = vcmask 785408  }
  0x12   : > { %s3429_s13 = scalar_lea.vmem %s3946_s0, %s2760_s8  ;;  %v3299_v39 = vld [vmem:[%s3950_s4 + $0x30] sm:$0xff]   ;;  %v3301_v42 = vld [vmem:[%s3950_s4 + $0x38] sm:$0xff]   ;;  %v3534_v50 = vld [vmem:[%s3948_s2] ss:$0 sm:$0xff]  ;;  %p252_p4 = scmp.lt.s32.totalorder %s3406_s22, 1 }
  0x13   : > { %v3254_v7 = vld [vmem:[%s3429_s13] sm:$0xff]   ;;  %v3255_v8 = vld [vmem:[%s3429_s13 + $0x8] sm:$0xff]   ;;  %v3256_v9 = vld [vmem:[%s3429_s13 + $0x10] sm:$0xff]  }
  0x14   : > { %2984 = vmatpush3.bf16.msra.mxu1 %v3282_v4  ;;  %2917 = vmatprep.mubr.msk.bf16.mxu0 %vm496_vm1, %v3254_v7  ;;  %v3257_v11 = vld [vmem:[%s3429_s13 + $0x18] sm:$0xff]   ;;  %v3258_v12 = vld [vmem:[%s3429_s13 + $0x20] sm:$0xff]   ;;  %v3259_v13 = vld [vmem:[%s3429_s13 + $0x28] sm:$0xff]   ;;  %s4025_s22 = smov (!%p252_p4, %s3406_s22), 1 }
  0x15   : > { %2985 = vmatprep.subr.bf16.mxu1 %v3286_v5  ;;  %2918 = vmatmul.mubr.msk.bf16.vlgmr.msra.gmra.mrb[0].mxu0 %vm496_vm1, %v3255_v8  ;;  %v3260_v14 = vld [vmem:[%s3429_s13 + $0x30] sm:$0xff]   ;;  %v3261_v15 = vld [vmem:[%s3429_s13 + $0x38] sm:$0xff]   ;;  %v3262_v16 = vld [vmem:[%s3429_s13 + $0x40] sm:$0xff]   ;;  %s2761_s25 = sshll.u32 %s4025_s22, 4 }
  0x16   : > { %2921 = vmatprep.mubr.msk.bf16.mxu0 %vm496_vm1, %v3256_v9  ;;  %3062 = vmatpush3.bf16.msra.mxu0 %v3281_v3  ;;  %v3263_v19 = vld [vmem:[%s3429_s13 + $0x48] sm:$0xff]   ;;  %v3264_v20 = vld [vmem:[%s3429_s13 + $0x50] sm:$0xff]   ;;  %v3265_v25 = vld [vmem:[%s3429_s13 + $0x58] sm:$0xff]   ;;  %s256_s28 = scalar_lea.vmem %s3952_s6, %s2761_s25 }
  0x17   : > { %3063 = vmatprep.subr.bf16.mxu0 %v3283_v6  ;;  %v3266_v26 = vld [vmem:[%s3429_s13 + $0x60] sm:$0xff]   ;;  %v3267_v27 = vld [vmem:[%s3429_s13 + $0x68] sm:$0xff]   ;;  %v3268_v28 = vld [vmem:[%s3429_s13 + $0x70] sm:$0xff]  }
  0x18   : > { %2986 = vmatpush3.bf16.msra.mxu1 %v3286_v5  ;;  %v3269_v29 = vld [vmem:[%s3429_s13 + $0x78] sm:$0xff]   ;;  %v3270_v30 = vld [vmem:[%s3429_s13 + $0x80] sm:$0xff]   ;;  %v3271_v31 = vld [vmem:[%s3429_s13 + $0x88] sm:$0xff]  }
  0x19   : > { %2987 = vmatprep.subr.bf16.mxu1 %v3288_v17  ;;  %v3272_v32 = vld [vmem:[%s3429_s13 + $0x90] sm:$0xff]   ;;  %v3273_v33 = vld [vmem:[%s3429_s13 + $0x98] sm:$0xff]   ;;  %v3274_v34 = vld [vmem:[%s3429_s13 + $0xa0] sm:$0xff]  }
  0x1a   : > { %3064 = vmatpush3.bf16.msra.mxu0 %v3283_v6  ;;  %v3275_v35 = vld [vmem:[%s3429_s13 + $0xa8] sm:$0xff]   ;;  %v3276_v36 = vld [vmem:[%s3429_s13 + $0xb0] sm:$0xff]   ;;  %v3277_v37 = vld [vmem:[%s3429_s13 + $0xb8] sm:$0xff]  }
  0x1b   : > { %3065 = vmatprep.subr.bf16.mxu0 %v3287_v10  ;;  %v3278_v40 = vld [vmem:[%s3429_s13 + $0xc0] sm:$0xff]   ;;  %v3279_v43 = vld [vmem:[%s3429_s13 + $0xc8] sm:$0xff]   ;;  %v3284_v44 = vld [vmem:[%s3429_s13 + $0xd0] sm:$0xff]  }
  0x1c   : > { %2988 = vmatpush3.bf16.msra.mxu1 %v3288_v17  ;;  %v3285_v45 = vld [vmem:[%s3429_s13 + $0xd8] sm:$0xff]   ;;  %v3290_v46 = vld [vmem:[%s3429_s13 + $0xe0] sm:$0xff]   ;;  %v3291_v47 = vld [vmem:[%s3429_s13 + $0xe8] sm:$0xff]  }
  0x1d   : > { %2922 = vmatmul.mubr.msk.bf16.gmra.mrb[4].mxu0 %vm496_vm1, %v3257_v11  ;;  %2989 = vmatprep.subr.bf16.mxu1 %v3292_v21  ;;  %v3296_v48 = vld [vmem:[%s3429_s13 + $0xf0] sm:$0xff]   ;;  %v3297_v49 = vld [vmem:[%s3429_s13 + $0xf8] sm:$0xff]  }
  0x1e   : > { %2925 = vmatprep.mubr.msk.bf16.mxu0 %vm496_vm1, %v3258_v12  ;;  %3066 = vmatpush3.bf16.msra.mxu0 %v3287_v10 }
  0x1f   : > { %3067 = vmatprep.subr.bf16.mxu0 %v3289_v18 }
  0x20   : > { %2990 = vmatpush3.bf16.msra.mxu1 %v3292_v21 }
  0x21   : > { %2991 = vmatprep.subr.bf16.mxu1 %v3294_v23 }
  0x22   : > { %3068 = vmatpush3.bf16.msra.mxu0 %v3289_v18 }
  0x23   : > { %3069 = vmatprep.subr.bf16.mxu0 %v3293_v22 }
  0x24   : > { %2992 = vmatpush3.bf16.msra.mxu1 %v3294_v23 }
  0x25   : > { %2926 = vmatmul.mubr.msk.bf16.gmra.mrb[8].mxu0 %vm496_vm1, %v3259_v13  ;;  %2993 = vmatprep.subr.bf16.mxu1 %v3298_v38 }
  0x26   : > { %2929 = vmatprep.mubr.msk.bf16.mxu0 %vm496_vm1, %v3260_v14  ;;  %3070 = vmatpush3.bf16.msra.mxu0 %v3293_v22 }
  0x27   : > { %3071 = vmatprep.subr.bf16.mxu0 %v3295_v24 }
  0x28   : > { %2994 = vmatpush3.bf16.msra.mxu1 %v3298_v38 }
  0x29   : > { %2995 = vmatprep.subr.bf16.mxu1 %v3300_v41 }
  0x2a   : > { %3072 = vmatpush3.bf16.msra.mxu0 %v3295_v24 }
  0x2b   : > { %3073 = vmatprep.subr.bf16.mxu0 %v3299_v39 }
  0x2c   : > { %2996 = vmatpush3.bf16.msra.mxu1 %v3300_v41 }
  0x2d   : > { %2930 = vmatmul.mubr.msk.bf16.gmra.mrb[12].mxu0 %vm496_vm1, %v3261_v15 }
  0x2e   : > { %2933 = vmatprep.mubr.msk.bf16.mxu0 %vm496_vm1, %v3262_v16  ;;  %3074 = vmatpush3.bf16.msra.mxu0 %v3299_v39 }
  0x2f   : > { %3075 = vmatprep.subr.bf16.mxu0 %v3301_v42 }
  0x32   : > { %3076 = vmatpush3.bf16.msra.mxu0 %v3301_v42 }
  0x35   : > { %2934 = vmatmul.mubr.msk.bf16.gmra.mrb[16].mxu0 %vm496_vm1, %v3263_v19 }
  0x36   : > { %2937 = vmatprep.mubr.msk.bf16.mxu0 %vm496_vm1, %v3264_v20 }
  0x3d   : > { %2938 = vmatmul.mubr.msk.bf16.gmra.mrb[20].mxu0 %vm496_vm1, %v3265_v25 }
  0x3e   : > { %2941 = vmatprep.mubr.msk.bf16.mxu0 %vm496_vm1, %v3266_v26 }
  0x45   : > { %2942 = vmatmul.mubr.msk.bf16.gmra.mrb[24].mxu0 %vm496_vm1, %v3267_v27 }
  0x46   : > { %2945 = vmatprep.mubr.msk.bf16.mxu0 %vm496_vm1, %v3268_v28 }
  0x4d   : > { %2946 = vmatmul.mubr.msk.bf16.gmra.mrb[28].mxu0 %vm496_vm1, %v3269_v29 }
  0x4e   : > { %2949 = vmatprep.mubr.msk.bf16.mxu0 %vm496_vm1, %v3270_v30 }
  0x55   : > { %2950 = vmatmul.mubr.msk.bf16.gmra.mrb[32].mxu0 %vm496_vm1, %v3271_v31 }
  0x56   : > { %2953 = vmatprep.mubr.msk.bf16.mxu0 %vm496_vm1, %v3272_v32 }
  0x5d   : > { %2954 = vmatmul.mubr.msk.bf16.gmra.mrb[36].mxu0 %vm496_vm1, %v3273_v33 }
  0x5e   : > { %2957 = vmatprep.mubr.msk.bf16.mxu0 %vm496_vm1, %v3274_v34 }
  0x65   : > { %2958 = vmatmul.mubr.msk.bf16.gmra.mrb[40].mxu0 %vm496_vm1, %v3275_v35 }
  0x66   : > { %2961 = vmatprep.mubr.msk.bf16.mxu0 %vm496_vm1, %v3276_v36 }
  0x6d   : > { %2962 = vmatmul.mubr.msk.bf16.gmra.mrb[44].mxu0 %vm496_vm1, %v3277_v37 }
  0x6e   : > { %2965 = vmatprep.mubr.msk.bf16.mxu0 %vm496_vm1, %v3278_v40 }
  0x75   : > { %2966 = vmatmul.mubr.msk.bf16.gmra.mrb[48].mxu0 %vm496_vm1, %v3279_v43 }
  0x76   : > { %2969 = vmatprep.mubr.msk.bf16.mxu0 %vm496_vm1, %v3284_v44 }
  0x7d   : > { %2970 = vmatmul.mubr.msk.bf16.gmra.mrb[52].mxu0 %vm496_vm1, %v3285_v45 }
  0x7e   : > { %2973 = vmatprep.mubr.msk.bf16.mxu0 %vm496_vm1, %v3290_v46 }
  0x85   : > { %2974 = vmatmul.mubr.msk.bf16.gmra.mrb[56].mxu0 %vm496_vm1, %v3291_v47 }
  0x86   : > { %2977 = vmatprep.mubr.msk.bf16.mxu0 %vm496_vm1, %v3296_v48 }
  0x8d   : > { %2978 = vmatmul.mubr.msk.bf16.gmra.mrb[60].mxu0 %vm496_vm1, %v3297_v49 }
  0xe8   : > { %v2919_v51 = vpop.f32.mrb[0].mxu0 }
  0xe9   : > { %v640_v52 = vadd.f32 %v2919_v51, %v3534_v50  ;;  %v631_v53 = vpop.f32.mrb[1].mxu0 }
  0xea   : > { %v632_v54 = vadd.f32 %v3534_v50, %v631_v53  ;;  %v2920_v55 = vpop.f32.mrb[2].mxu0 }
  0xeb   : > { %v643_v56 = vadd.f32 %v2920_v55, %v3534_v50  ;;  %v634_v57 = vpop.f32.mrb[3].mxu0  ;;  %v888_v59 = vmax.f32 %v640_v52, 0.0 }
  0xec   : > { %v635_v58 = vadd.f32 %v3534_v50, %v634_v57  ;;  %v886_v61 = vmax.f32 %v632_v54, 0.0 }
  0xed   : > { %v889_v60 = vmax.f32 %v643_v56, 0.0 }
  0xee   : > { %v887_v62 = vmax.f32 %v635_v58, 0.0 }
  0xef   : > { %v951_v63 = vpack.c.bf16 %v889_v60, %v888_v59 }
  0xf0   : > { %v2923_v0 = vpop.f32.mrb[4].mxu0  ;;  %v950_v1 = vpack.c.bf16 %v887_v62, %v886_v61 }
  0xf1   : > { %v656_v2 = vadd.f32 %v2923_v0, %v3534_v50  ;;  %v647_v3 = vpop.f32.mrb[5].mxu0 }
  0xf2   : > { %v648_v4 = vadd.f32 %v3534_v50, %v647_v3  ;;  %v2924_v5 = vpop.f32.mrb[6].mxu0  ;;  %2997 = vmatprep.mubr.bf16.mxu1 %v950_v1  ;;  %3077 = vmatprep.mubr.bf16.mxu0 %v950_v1 }
  0xf3   : > { %v659_v6 = vadd.f32 %v2924_v5, %v3534_v50  ;;  %v650_v7 = vpop.f32.mrb[7].mxu0  ;;  %2998 = vmatmul.mubr.bf16.vlgmr.msra.gmra.mrb[0].mxu1 %v951_v63  ;;  %3078 = vmatmul.mubr.bf16.vlgmr.msra.gmra.mrb[64].mxu0 %v951_v63  ;;  %v892_v9 = vmax.f32 %v656_v2, 0.0 }
  0xf4   : > { %v651_v8 = vadd.f32 %v3534_v50, %v650_v7  ;;  %v890_v11 = vmax.f32 %v648_v4, 0.0 }
  0xf5   : > { %v893_v10 = vmax.f32 %v659_v6, 0.0 }
  0xf6   : > { %v891_v12 = vmax.f32 %v651_v8, 0.0 }
  0xf7   : > { %v953_v13 = vpack.c.bf16 %v893_v10, %v892_v9 }
  0xf8   : > { %v952_v14 = vpack.c.bf16 %v891_v12, %v890_v11  ;;  %v2927_v15 = vpop.f32.mrb[8].mxu0 }
  0xf9   : > { %v672_v16 = vadd.f32 %v2927_v15, %v3534_v50  ;;  %v663_v17 = vpop.f32.mrb[9].mxu0 }
  0xfa   : > { %v664_v18 = vadd.f32 %v3534_v50, %v663_v17  ;;  %v2928_v19 = vpop.f32.mrb[10].mxu0  ;;  %3001 = vmatprep.mubr.bf16.mxu1 %v952_v14  ;;  %3081 = vmatprep.mubr.bf16.mxu0 %v952_v14 }
  0xfb   : > { %v675_v20 = vadd.f32 %v2928_v19, %v3534_v50  ;;  %v666_v21 = vpop.f32.mrb[11].mxu0  ;;  %3002 = vmatmul.mubr.bf16.gmra.mrb[4].mxu1 %v953_v13  ;;  %3082 = vmatmul.mubr.bf16.gmra.mrb[68].mxu0 %v953_v13  ;;  %v896_v23 = vmax.f32 %v672_v16, 0.0 }
  0xfc   : > { %v667_v22 = vadd.f32 %v3534_v50, %v666_v21  ;;  %v894_v25 = vmax.f32 %v664_v18, 0.0 }
  0xfd   : > { %v897_v24 = vmax.f32 %v675_v20, 0.0 }
  0xfe   : > { %v895_v26 = vmax.f32 %v667_v22, 0.0 }
  0xff   : > { %v955_v27 = vpack.c.bf16 %v897_v24, %v896_v23 }
 0x100   : > { %v954_v28 = vpack.c.bf16 %v895_v26, %v894_v25  ;;  %v2931_v29 = vpop.f32.mrb[12].mxu0 }
 0x101   : > { %v688_v30 = vadd.f32 %v2931_v29, %v3534_v50  ;;  %v679_v31 = vpop.f32.mrb[13].mxu0 }
 0x102   : > { %v680_v32 = vadd.f32 %v3534_v50, %v679_v31  ;;  %v2932_v33 = vpop.f32.mrb[14].mxu0  ;;  %3005 = vmatprep.mubr.bf16.mxu1 %v954_v28  ;;  %3085 = vmatprep.mubr.bf16.mxu0 %v954_v28 }
 0x103   : > { %v691_v34 = vadd.f32 %v2932_v33, %v3534_v50  ;;  %v682_v35 = vpop.f32.mrb[15].mxu0  ;;  %3006 = vmatmul.mubr.bf16.gmra.mrb[8].mxu1 %v955_v27  ;;  %3086 = vmatmul.mubr.bf16.gmra.mrb[72].mxu0 %v955_v27  ;;  %v900_v37 = vmax.f32 %v688_v30, 0.0 }
 0x104   : > { %v683_v36 = vadd.f32 %v3534_v50, %v682_v35  ;;  %v898_v39 = vmax.f32 %v680_v32, 0.0 }
 0x105   : > { %v901_v38 = vmax.f32 %v691_v34, 0.0 }
 0x106   : > { %v899_v40 = vmax.f32 %v683_v36, 0.0 }
 0x107   : > { %v957_v41 = vpack.c.bf16 %v901_v38, %v900_v37 }
 0x108   : > { %v956_v42 = vpack.c.bf16 %v899_v40, %v898_v39  ;;  %v2935_v43 = vpop.f32.mrb[16].mxu0 }
 0x109   : > { %v704_v44 = vadd.f32 %v2935_v43, %v3534_v50  ;;  %v695_v45 = vpop.f32.mrb[17].mxu0 }
 0x10a   : > { %v696_v46 = vadd.f32 %v3534_v50, %v695_v45  ;;  %v2936_v47 = vpop.f32.mrb[18].mxu0  ;;  %3009 = vmatprep.mubr.bf16.mxu1 %v956_v42  ;;  %3089 = vmatprep.mubr.bf16.mxu0 %v956_v42 }
 0x10b   : > { %v707_v48 = vadd.f32 %v2936_v47, %v3534_v50  ;;  %v698_v49 = vpop.f32.mrb[19].mxu0  ;;  %3010 = vmatmul.mubr.bf16.gmra.mrb[12].mxu1 %v957_v41  ;;  %3090 = vmatmul.mubr.bf16.gmra.mrb[76].mxu0 %v957_v41  ;;  %v904_v52 = vmax.f32 %v704_v44, 0.0 }
 0x10c   : > { %v699_v51 = vadd.f32 %v3534_v50, %v698_v49  ;;  %v902_v54 = vmax.f32 %v696_v46, 0.0 }
 0x10d   : > { %v905_v53 = vmax.f32 %v707_v48, 0.0 }
 0x10e   : > { %v903_v55 = vmax.f32 %v699_v51, 0.0 }
 0x10f   : > { %v959_v56 = vpack.c.bf16 %v905_v53, %v904_v52 }
 0x110   : > { %v958_v57 = vpack.c.bf16 %v903_v55, %v902_v54  ;;  %v2939_v58 = vpop.f32.mrb[20].mxu0 }
 0x111   : > { %v720_v59 = vadd.f32 %v2939_v58, %v3534_v50  ;;  %v711_v60 = vpop.f32.mrb[21].mxu0 }
 0x112   : > { %v712_v61 = vadd.f32 %v3534_v50, %v711_v60  ;;  %v2940_v62 = vpop.f32.mrb[22].mxu0  ;;  %3013 = vmatprep.mubr.bf16.mxu1 %v958_v57  ;;  %3093 = vmatprep.mubr.bf16.mxu0 %v958_v57 }
 0x113   : > { %v908_v63 = vmax.f32 %v720_v59, 0.0  ;;  %v723_v0 = vadd.f32 %v2940_v62, %v3534_v50  ;;  %v714_v1 = vpop.f32.mrb[23].mxu0  ;;  %3014 = vmatmul.mubr.bf16.gmra.mrb[16].mxu1 %v959_v56  ;;  %3094 = vmatmul.mubr.bf16.gmra.mrb[80].mxu0 %v959_v56 }
 0x114   : > { %v906_v2 = vmax.f32 %v712_v61, 0.0  ;;  %v715_v3 = vadd.f32 %v3534_v50, %v714_v1 }
 0x115   : > { %v909_v4 = vmax.f32 %v723_v0, 0.0 }
 0x116   : > { %v907_v5 = vmax.f32 %v715_v3, 0.0 }
 0x117   : > { %v961_v6 = vpack.c.bf16 %v909_v4, %v908_v63 }
 0x118   : > { %v960_v7 = vpack.c.bf16 %v907_v5, %v906_v2  ;;  %v2943_v8 = vpop.f32.mrb[24].mxu0 }
 0x119   : > { %v736_v9 = vadd.f32 %v2943_v8, %v3534_v50  ;;  %v727_v10 = vpop.f32.mrb[25].mxu0 }
 0x11a   : > { %v728_v11 = vadd.f32 %v3534_v50, %v727_v10  ;;  %v2944_v12 = vpop.f32.mrb[26].mxu0  ;;  %3017 = vmatprep.mubr.bf16.mxu1 %v960_v7  ;;  %3097 = vmatprep.mubr.bf16.mxu0 %v960_v7 }
 0x11b   : > { %v912_v13 = vmax.f32 %v736_v9, 0.0  ;;  %v739_v14 = vadd.f32 %v2944_v12, %v3534_v50  ;;  %v730_v15 = vpop.f32.mrb[27].mxu0  ;;  %3018 = vmatmul.mubr.bf16.gmra.mrb[20].mxu1 %v961_v6  ;;  %3098 = vmatmul.mubr.bf16.gmra.mrb[84].mxu0 %v961_v6 }
 0x11c   : > { %v910_v16 = vmax.f32 %v728_v11, 0.0  ;;  %v731_v17 = vadd.f32 %v3534_v50, %v730_v15 }
 0x11d   : > { %v913_v18 = vmax.f32 %v739_v14, 0.0 }
 0x11e   : > { %v911_v19 = vmax.f32 %v731_v17, 0.0 }
 0x11f   : > { %v963_v20 = vpack.c.bf16 %v913_v18, %v912_v13 }
 0x120   : > { %v962_v21 = vpack.c.bf16 %v911_v19, %v910_v16  ;;  %v2947_v22 = vpop.f32.mrb[28].mxu0 }
 0x121   : > { %v752_v23 = vadd.f32 %v2947_v22, %v3534_v50  ;;  %v743_v24 = vpop.f32.mrb[29].mxu0 }
 0x122   : > { %v744_v25 = vadd.f32 %v3534_v50, %v743_v24  ;;  %v2948_v26 = vpop.f32.mrb[30].mxu0  ;;  %3021 = vmatprep.mubr.bf16.mxu1 %v962_v21  ;;  %3101 = vmatprep.mubr.bf16.mxu0 %v962_v21 }
 0x123   : > { %v916_v27 = vmax.f32 %v752_v23, 0.0  ;;  %v755_v28 = vadd.f32 %v2948_v26, %v3534_v50  ;;  %v746_v29 = vpop.f32.mrb[31].mxu0  ;;  %3022 = vmatmul.mubr.bf16.gmra.mrb[24].mxu1 %v963_v20  ;;  %3102 = vmatmul.mubr.bf16.gmra.mrb[88].mxu0 %v963_v20 }
 0x124   : > { %v914_v30 = vmax.f32 %v744_v25, 0.0  ;;  %v747_v31 = vadd.f32 %v3534_v50, %v746_v29 }
 0x125   : > { %v917_v32 = vmax.f32 %v755_v28, 0.0 }
 0x126   : > { %v915_v33 = vmax.f32 %v747_v31, 0.0 }
 0x127   : > { %v965_v34 = vpack.c.bf16 %v917_v32, %v916_v27 }
 0x128   : > { %v964_v35 = vpack.c.bf16 %v915_v33, %v914_v30  ;;  %v2951_v36 = vpop.f32.mrb[32].mxu0 }
 0x129   : > { %v768_v37 = vadd.f32 %v2951_v36, %v3534_v50  ;;  %v759_v38 = vpop.f32.mrb[33].mxu0 }
 0x12a   : > { %v760_v39 = vadd.f32 %v3534_v50, %v759_v38  ;;  %v2952_v40 = vpop.f32.mrb[34].mxu0  ;;  %3025 = vmatprep.mubr.bf16.mxu1 %v964_v35  ;;  %3105 = vmatprep.mubr.bf16.mxu0 %v964_v35 }
 0x12b   : > { %v920_v41 = vmax.f32 %v768_v37, 0.0  ;;  %v771_v42 = vadd.f32 %v2952_v40, %v3534_v50  ;;  %v762_v43 = vpop.f32.mrb[35].mxu0  ;;  %3026 = vmatmul.mubr.bf16.gmra.mrb[28].mxu1 %v965_v34  ;;  %3106 = vmatmul.mubr.bf16.gmra.mrb[92].mxu0 %v965_v34 }
 0x12c   : > { %v918_v44 = vmax.f32 %v760_v39, 0.0  ;;  %v763_v45 = vadd.f32 %v3534_v50, %v762_v43  ;;  %v3953_v39 = vmov 0.0  }
 0x12d   : > { %v921_v46 = vmax.f32 %v771_v42, 0.0  ;;  %3141 = vmatprep.subr.bf16.mxu1 %v3953_v39  ;;  %3225 = vmatprep.subr.bf16.mxu0 %v3953_v39 }
 0x12e   : > { %v919_v47 = vmax.f32 %v763_v45, 0.0 }
 0x12f   : > { %v967_v48 = vpack.c.bf16 %v921_v46, %v920_v41 }
 0x130   : > { %v966_v49 = vpack.c.bf16 %v919_v47, %v918_v44  ;;  %v2955_v51 = vpop.f32.mrb[36].mxu0 }
 0x131   : > { %v784_v52 = vadd.f32 %v2955_v51, %v3534_v50  ;;  %v775_v53 = vpop.f32.mrb[37].mxu0 }
 0x132   : > { %3029 = vmatprep.mubr.bf16.mxu1 %v966_v49  ;;  %v776_v54 = vadd.f32 %v3534_v50, %v775_v53  ;;  %v2956_v55 = vpop.f32.mrb[38].mxu0  ;;  %3109 = vmatprep.mubr.bf16.mxu0 %v966_v49 }
 0x133   : > { %3030 = vmatmul.mubr.bf16.gmra.mrb[32].mxu1 %v967_v48  ;;  %v924_v56 = vmax.f32 %v784_v52, 0.0  ;;  %v787_v57 = vadd.f32 %v2956_v55, %v3534_v50  ;;  %v778_v58 = vpop.f32.mrb[39].mxu0  ;;  %3110 = vmatmul.mubr.bf16.gmra.mrb[96].mxu0 %v967_v48 }
 0x134   : > { %v922_v59 = vmax.f32 %v776_v54, 0.0  ;;  %v779_v60 = vadd.f32 %v3534_v50, %v778_v58 }
 0x135   : > { %v925_v61 = vmax.f32 %v787_v57, 0.0 }
 0x136   : > { %v923_v62 = vmax.f32 %v779_v60, 0.0 }
 0x137   : > { %v969_v63 = vpack.c.bf16 %v925_v61, %v924_v56 }
 0x138   : > { %v968_v0 = vpack.c.bf16 %v923_v62, %v922_v59  ;;  %v2959_v1 = vpop.f32.mrb[40].mxu0 }
 0x139   : > { %v800_v2 = vadd.f32 %v2959_v1, %v3534_v50  ;;  %v791_v3 = vpop.f32.mrb[41].mxu0 }
 0x13a   : > { %3033 = vmatprep.mubr.bf16.mxu1 %v968_v0  ;;  %v792_v4 = vadd.f32 %v3534_v50, %v791_v3  ;;  %v2960_v5 = vpop.f32.mrb[42].mxu0  ;;  %3113 = vmatprep.mubr.bf16.mxu0 %v968_v0 }
 0x13b   : > { %3034 = vmatmul.mubr.bf16.gmra.mrb[36].mxu1 %v969_v63  ;;  %v928_v6 = vmax.f32 %v800_v2, 0.0  ;;  %v803_v7 = vadd.f32 %v2960_v5, %v3534_v50  ;;  %v794_v8 = vpop.f32.mrb[43].mxu0  ;;  %3114 = vmatmul.mubr.bf16.gmra.mrb[100].mxu0 %v969_v63 }
 0x13c   : > { %v926_v9 = vmax.f32 %v792_v4, 0.0  ;;  %v795_v10 = vadd.f32 %v3534_v50, %v794_v8 }
 0x13d   : > { %v929_v11 = vmax.f32 %v803_v7, 0.0 }
 0x13e   : > { %v927_v12 = vmax.f32 %v795_v10, 0.0 }
 0x13f   : > { %v971_v13 = vpack.c.bf16 %v929_v11, %v928_v6 }
 0x140   : > { %v970_v14 = vpack.c.bf16 %v927_v12, %v926_v9  ;;  %v2963_v15 = vpop.f32.mrb[44].mxu0 }
 0x141   : > { %v816_v16 = vadd.f32 %v2963_v15, %v3534_v50  ;;  %v807_v17 = vpop.f32.mrb[45].mxu0 }
 0x142   : > { %3037 = vmatprep.mubr.bf16.mxu1 %v970_v14  ;;  %v808_v18 = vadd.f32 %v3534_v50, %v807_v17  ;;  %v2964_v19 = vpop.f32.mrb[46].mxu0  ;;  %3117 = vmatprep.mubr.bf16.mxu0 %v970_v14 }
 0x143   : > { %3038 = vmatmul.mubr.bf16.gmra.mrb[40].mxu1 %v971_v13  ;;  %v932_v20 = vmax.f32 %v816_v16, 0.0  ;;  %v819_v21 = vadd.f32 %v2964_v19, %v3534_v50  ;;  %v810_v22 = vpop.f32.mrb[47].mxu0  ;;  %3118 = vmatmul.mubr.bf16.gmra.mrb[104].mxu0 %v971_v13 }
 0x144   : > { %v930_v23 = vmax.f32 %v808_v18, 0.0  ;;  %v811_v24 = vadd.f32 %v3534_v50, %v810_v22 }
 0x145   : > { %v933_v25 = vmax.f32 %v819_v21, 0.0 }
 0x146   : > { %v931_v26 = vmax.f32 %v811_v24, 0.0 }
 0x147   : > { %v973_v27 = vpack.c.bf16 %v933_v25, %v932_v20 }
 0x148   : > { %v972_v28 = vpack.c.bf16 %v931_v26, %v930_v23  ;;  %v2967_v29 = vpop.f32.mrb[48].mxu0 }
 0x149   : > { %v832_v30 = vadd.f32 %v2967_v29, %v3534_v50  ;;  %v823_v31 = vpop.f32.mrb[49].mxu0 }
 0x14a   : > { %3041 = vmatprep.mubr.bf16.mxu1 %v972_v28  ;;  %3121 = vmatprep.mubr.bf16.mxu0 %v972_v28  ;;  %v824_v32 = vadd.f32 %v3534_v50, %v823_v31  ;;  %v2968_v33 = vpop.f32.mrb[50].mxu0 }
 0x14b   : > { %3042 = vmatmul.mubr.bf16.gmra.mrb[44].mxu1 %v973_v27  ;;  %3122 = vmatmul.mubr.bf16.gmra.mrb[108].mxu0 %v973_v27  ;;  %v936_v34 = vmax.f32 %v832_v30, 0.0  ;;  %v835_v35 = vadd.f32 %v2968_v33, %v3534_v50  ;;  %v826_v36 = vpop.f32.mrb[51].mxu0 }
 0x14c   : > { %v934_v37 = vmax.f32 %v824_v32, 0.0  ;;  %v827_v38 = vadd.f32 %v3534_v50, %v826_v36 }
 0x14d   : > { %v937_v40 = vmax.f32 %v835_v35, 0.0 }
 0x14e   : > { %v935_v41 = vmax.f32 %v827_v38, 0.0 }
 0x14f   : > { %v975_v42 = vpack.c.bf16 %v937_v40, %v936_v34 }
 0x150   : > { %v974_v43 = vpack.c.bf16 %v935_v41, %v934_v37  ;;  %v2971_v44 = vpop.f32.mrb[52].mxu0 }
 0x151   : > { %v848_v45 = vadd.f32 %v2971_v44, %v3534_v50  ;;  %v839_v46 = vpop.f32.mrb[53].mxu0 }
 0x152   : > { %v840_v47 = vadd.f32 %v3534_v50, %v839_v46  ;;  %v2972_v48 = vpop.f32.mrb[54].mxu0  ;;  %3045 = vmatprep.mubr.bf16.mxu1 %v974_v43  ;;  %3125 = vmatprep.mubr.bf16.mxu0 %v974_v43 }
 0x153   : > { %v940_v49 = vmax.f32 %v848_v45, 0.0  ;;  %v851_v51 = vadd.f32 %v2972_v48, %v3534_v50  ;;  %v842_v52 = vpop.f32.mrb[55].mxu0  ;;  %3046 = vmatmul.mubr.bf16.gmra.mrb[48].mxu1 %v975_v42  ;;  %3126 = vmatmul.mubr.bf16.gmra.mrb[112].mxu0 %v975_v42 }
 0x154   : > { %v938_v53 = vmax.f32 %v840_v47, 0.0  ;;  %v843_v54 = vadd.f32 %v3534_v50, %v842_v52 }
 0x155   : > { %v941_v55 = vmax.f32 %v851_v51, 0.0 }
 0x156   : > { %v939_v56 = vmax.f32 %v843_v54, 0.0 }
 0x157   : > { %v977_v57 = vpack.c.bf16 %v941_v55, %v940_v49 }
 0x158   : > { %v976_v58 = vpack.c.bf16 %v939_v56, %v938_v53  ;;  %v2975_v59 = vpop.f32.mrb[56].mxu0 }
 0x159   : > { %v864_v60 = vadd.f32 %v2975_v59, %v3534_v50  ;;  %v855_v61 = vpop.f32.mrb[57].mxu0 }
 0x15a   : > { %v856_v62 = vadd.f32 %v3534_v50, %v855_v61  ;;  %v2976_v63 = vpop.f32.mrb[58].mxu0  ;;  %3049 = vmatprep.mubr.bf16.mxu1 %v976_v58  ;;  %3129 = vmatprep.mubr.bf16.mxu0 %v976_v58 }
 0x15b   : > { %v944_v0 = vmax.f32 %v864_v60, 0.0  ;;  %v867_v1 = vadd.f32 %v2976_v63, %v3534_v50  ;;  %v858_v2 = vpop.f32.mrb[59].mxu0  ;;  %3050 = vmatmul.mubr.bf16.gmra.mrb[52].mxu1 %v977_v57  ;;  %3130 = vmatmul.mubr.bf16.gmra.mrb[116].mxu0 %v977_v57 }
 0x15c   : > { %v942_v3 = vmax.f32 %v856_v62, 0.0  ;;  %v859_v4 = vadd.f32 %v3534_v50, %v858_v2 }
 0x15d   : > { %v945_v5 = vmax.f32 %v867_v1, 0.0 }
 0x15e   : > { %v943_v6 = vmax.f32 %v859_v4, 0.0 }
 0x15f   : > { %v979_v7 = vpack.c.bf16 %v945_v5, %v944_v0 }
 0x160   : > { %v978_v8 = vpack.c.bf16 %v943_v6, %v942_v3  ;;  %v2979_v9 = vpop.f32.mrb[60].mxu0 }
 0x161   : > { %v880_v10 = vadd.f32 %v2979_v9, %v3534_v50  ;;  %v871_v11 = vpop.f32.mrb[61].mxu0 }
 0x162   : > { %v872_v12 = vadd.f32 %v3534_v50, %v871_v11  ;;  %v2980_v13 = vpop.f32.mrb[62].mxu0  ;;  %3053 = vmatprep.mubr.bf16.mxu1 %v978_v8  ;;  %3133 = vmatprep.mubr.bf16.mxu0 %v978_v8 }
 0x163   : > { %v948_v14 = vmax.f32 %v880_v10, 0.0  ;;  %v883_v15 = vadd.f32 %v2980_v13, %v3534_v50  ;;  %v874_v16 = vpop.f32.mrb[63].mxu0  ;;  %3054 = vmatmul.mubr.bf16.gmra.mrb[56].mxu1 %v979_v7  ;;  %3134 = vmatmul.mubr.bf16.gmra.mrb[120].mxu0 %v979_v7 }
 0x164   : > { %v946_v17 = vmax.f32 %v872_v12, 0.0  ;;  %v875_v18 = vadd.f32 %v3534_v50, %v874_v16 }
 0x165   : > { %v949_v19 = vmax.f32 %v883_v15, 0.0 }
 0x166   : > { %v947_v20 = vmax.f32 %v875_v18, 0.0 }
 0x167   : > { %v981_v21 = vpack.c.bf16 %v949_v19, %v948_v14 }
 0x168   : > { %v980_v22 = vpack.c.bf16 %v947_v20, %v946_v17 }
 0x16a   : > { %3057 = vmatprep.mubr.bf16.mxu1 %v980_v22  ;;  %3137 = vmatprep.mubr.bf16.mxu0 %v980_v22 }
 0x16b   : > { %3058 = vmatmul.mubr.bf16.gmra.mrb[60].mxu1 %v981_v21  ;;  %3138 = vmatmul.mubr.bf16.gmra.mrb[124].mxu0 %v981_v21 }
 0x1c6   : > { %v2999_v23 = vpop.f32.mrb[0].mxu1  ;;  %v3079_v24 = vpop.f32.mrb[64].mxu0 }
 0x1c7   : > { %v1080_v25 = vpop.f32.mrb[1].mxu1  ;;  %v1433_v26 = vpop.f32.mrb[65].mxu0 }
 0x1c8   : > { %v3080_v27 = vpop.f32.mrb[66].mxu0  ;;  %1688 = vxpose.xlu0.b32.start [1/8] (short) (narrow) %v1080_v25, 8  ;;  %v3000_v28 = vpop.f32.mrb[2].mxu1 }
 0x1c9   : > { %v2034_v29 = vpack.c.bf16 %v3080_v27, %v3079_v24  ;;  %v1083_v30 = vpop.f32.mrb[3].mxu1  ;;  %v1436_v31 = vpop.f32.mrb[67].mxu0 }
 0x1ca   : > { %v2033_v32 = vpack.c.bf16 %v1436_v31, %v1433_v26 }
 0x1cc   : > { %3142 = vmatpush3.bf16.msra.mxu1 %v2033_v32  ;;  %1689 = vxpose.xlu0.b32.cont [2/8] (short) (narrow) %v1083_v30, 8 }
 0x1cd   : > { %3143 = vmatprep.subr.bf16.mxu1 %v3953_v39 }
 0x1ce   : > { %v3003_v50 = vpop.f32.mrb[4].mxu1  ;;  %v3083_v33 = vpop.f32.mrb[68].mxu0 }
 0x1cf   : > { %v1096_v34 = vpop.f32.mrb[5].mxu1  ;;  %v1449_v35 = vpop.f32.mrb[69].mxu0 }
 0x1d0   : > { %v3084_v36 = vpop.f32.mrb[70].mxu0  ;;  %3144 = vmatpush3.bf16.msra.mxu1 %v2034_v29  ;;  %1690 = vxpose.xlu0.b32.cont [3/8] (short) (narrow) %v2999_v23, 8  ;;  %v3004_v37 = vpop.f32.mrb[6].mxu1 }
 0x1d1   : > { %v2036_v38 = vpack.c.bf16 %v3084_v36, %v3083_v33  ;;  %v1099_v40 = vpop.f32.mrb[7].mxu1  ;;  %v1452_v41 = vpop.f32.mrb[71].mxu0  ;;  %3145 = vmatprep.subr.bf16.mxu1 %v3953_v39 }
 0x1d2   : > { %v2035_v42 = vpack.c.bf16 %v1452_v41, %v1449_v35 }
 0x1d4   : > { %3146 = vmatpush3.bf16.msra.mxu1 %v2035_v42  ;;  %1691 = vxpose.xlu0.b32.cont [4/8] (short) (narrow) %v3000_v28, 8 }
 0x1d5   : > { %3147 = vmatprep.subr.bf16.mxu1 %v3953_v39 }
 0x1d6   : > { %v3007_v43 = vpop.f32.mrb[8].mxu1  ;;  %v3605_v44 = vpop.f32.mrb[72].mxu0 }
 0x1d7   : > { %v1112_v45 = vpop.f32.mrb[9].mxu1  ;;  %v3607_v46 = vpop.f32.mrb[73].mxu0 }
 0x1d8   : > { %v3609_v47 = vpop.f32.mrb[74].mxu0  ;;  %3148 = vmatpush3.bf16.msra.mxu1 %v2036_v38  ;;  %1692 = vxpose.xlu0.b32.cont [5/8] (short) (narrow) %v1096_v34, 8  ;;  %v3008_v48 = vpop.f32.mrb[10].mxu1 }
 0x1d9   : > { %1720 = vxpose.xlu1.b32.start [1/8] (short) (narrow) %v1112_v45, 8  ;;  %v1115_v51 = vpop.f32.mrb[11].mxu1  ;;  %v3613_v52 = vpop.f32.mrb[75].mxu0  ;;  %3153 = vmatprep.subr.bf16.mxu1 %v3953_v39  ;;  %v3983_v39 = vmov 0.0  }
 0x1da   : > { %3149 = vmatprep.mubr.msk.bf16.mxu1 %vm3359_vm3, %v3983_v39  ;;  %3233 = vmatprep.mubr.msk.bf16.mxu0 %vm3359_vm3, %v3983_v39 }
 0x1dc   : > { %1693 = vxpose.xlu0.b32.cont [6/8] (short) (narrow) %v1099_v40, 8 }
 0x1dd   : > { %1721 = vxpose.xlu1.b32.cont [2/8] (short) (narrow) %v1115_v51, 8 }
 0x1de   : > { %v3011_v54 = vpop.f32.mrb[12].mxu1  ;;  %v3618_v55 = vpop.f32.mrb[76].mxu0 }
 0x1df   : > { %v1128_v56 = vpop.f32.mrb[13].mxu1  ;;  %v3620_v57 = vpop.f32.mrb[77].mxu0 }
 0x1e0   : > { %v3622_v58 = vpop.f32.mrb[78].mxu0  ;;  %1694 = vxpose.xlu0.b32.cont [7/8] (short) (narrow) %v3003_v50, 8  ;;  %v3012_v59 = vpop.f32.mrb[14].mxu1 }
 0x1e1   : > { %1722 = vxpose.xlu1.b32.cont [3/8] (short) (narrow) %v3007_v43, 8  ;;  %v1131_v61 = vpop.f32.mrb[15].mxu1  ;;  %v3626_v62 = vpop.f32.mrb[79].mxu0 }
 0x1e4   : > { %1695 = vxpose.xlu0.b32.end [8/8] (short) (narrow) %v3004_v37, 8 }
 0x1e5   : > { %1723 = vxpose.xlu1.b32.cont [4/8] (short) (narrow) %v3008_v48, 8 }
 0x1e6   : > { %v3015_v0 = vpop.f32.mrb[16].mxu1  ;;  %v3630_v1 = vpop.f32.mrb[80].mxu0 }
 0x1e7   : > { %v1144_v2 = vpop.f32.mrb[17].mxu1  ;;  %v3632_v3 = vpop.f32.mrb[81].mxu0 }
 0x1e8   : > { %v3634_v4 = vpop.f32.mrb[82].mxu0  ;;  %1752 = vxpose.xlu0.b32.start [1/8] (short) (narrow) %v1144_v2, 8  ;;  %v3016_v5 = vpop.f32.mrb[18].mxu1 }
 0x1e9   : > { %1724 = vxpose.xlu1.b32.cont [5/8] (short) (narrow) %v1128_v56, 8  ;;  %v1147_v7 = vpop.f32.mrb[19].mxu1  ;;  %v3638_v8 = vpop.f32.mrb[83].mxu0 }
 0x1ec   : > { %1753 = vxpose.xlu0.b32.cont [2/8] (short) (narrow) %v1147_v7, 8 }
 0x1ed   : > { %1725 = vxpose.xlu1.b32.cont [6/8] (short) (narrow) %v1131_v61, 8 }
 0x1ee   : > { %v3019_v10 = vpop.f32.mrb[20].mxu1  ;;  %v3642_v11 = vpop.f32.mrb[84].mxu0 }
 0x1ef   : > { %v3644_v12 = vpop.f32.mrb[85].mxu0  ;;  %v1160_v13 = vpop.f32.mrb[21].mxu1 }
 0x1f0   : > { %1754 = vxpose.xlu0.b32.cont [3/8] (short) (narrow) %v3015_v0, 8  ;;  %v3020_v14 = vpop.f32.mrb[22].mxu1  ;;  %v3646_v15 = vpop.f32.mrb[86].mxu0 }
 0x1f1   : > { %1726 = vxpose.xlu1.b32.cont [7/8] (short) (narrow) %v3011_v54, 8  ;;  %v1163_v17 = vpop.f32.mrb[23].mxu1  ;;  %v3650_v18 = vpop.f32.mrb[87].mxu0 }
 0x1f4   : > { %1755 = vxpose.xlu0.b32.cont [4/8] (short) (narrow) %v3016_v5, 8 }
 0x1f5   : > { %1727 = vxpose.xlu1.b32.end [8/8] (short) (narrow) %v3012_v59, 8 }
 0x1f6   : > { %v3023_v20 = vpop.f32.mrb[24].mxu1  ;;  %v3654_v21 = vpop.f32.mrb[88].mxu0 }
 0x1f7   : > { %v1176_v22 = vpop.f32.mrb[25].mxu1  ;;  %v3656_v23 = vpop.f32.mrb[89].mxu0 }
 0x1f8   : > { %1756 = vxpose.xlu0.b32.cont [5/8] (short) (narrow) %v1160_v13, 8  ;;  %v3024_v24 = vpop.f32.mrb[26].mxu1  ;;  %v3658_v25 = vpop.f32.mrb[90].mxu0 }
 0x1f9   : > { %v1179_v26 = vpop.f32.mrb[27].mxu1  ;;  %v3662_v28 = vpop.f32.mrb[91].mxu0 }
 0x1fc   : > { %1757 = vxpose.xlu0.b32.cont [6/8] (short) (narrow) %v1163_v17, 8 }
 0x1fe   : > { %v3027_v30 = vpop.f32.mrb[28].mxu1  ;;  %v3666_v31 = vpop.f32.mrb[92].mxu0 }
 0x1ff   : > { %v1192_v32 = vpop.f32.mrb[29].mxu1  ;;  %v3668_v50 = vpop.f32.mrb[93].mxu0 }
 0x200   : > { %1758 = vxpose.xlu0.b32.cont [7/8] (short) (narrow) %v3019_v10, 8  ;;  %v3028_v33 = vpop.f32.mrb[30].mxu1  ;;  %v3670_v34 = vpop.f32.mrb[94].mxu0 }
 0x201   : > { %v1195_v35 = vpop.f32.mrb[31].mxu1  ;;  %v3674_v37 = vpop.f32.mrb[95].mxu0 }
 0x204   : > { %1759 = vxpose.xlu0.b32.end [8/8] (short) (narrow) %v3020_v14, 8 }
 0x206   : > { %v3031_v40 = vpop.f32.mrb[32].mxu1  ;;  %v3678_v41 = vpop.f32.mrb[96].mxu0 }
 0x207   : > { %v1208_v42 = vpop.f32.mrb[33].mxu1  ;;  %v3680_v43 = vpop.f32.mrb[97].mxu0 }
 0x208   : > { %1784 = vxpose.xlu0.b32.start [1/8] (short) (narrow) %v1176_v22, 8  ;;  %1816 = vxpose.xlu1.b32.start [1/8] (short) (narrow) %v1208_v42, 8  ;;  %v3032_v45 = vpop.f32.mrb[34].mxu1  ;;  %v3682_v48 = vpop.f32.mrb[98].mxu0 }
 0x209   : > { %v1211_v51 = vpop.f32.mrb[35].mxu1  ;;  %v3686_v56 = vpop.f32.mrb[99].mxu0 }
 0x20c   : > { %1785 = vxpose.xlu0.b32.cont [2/8] (short) (narrow) %v1179_v26, 8  ;;  %1817 = vxpose.xlu1.b32.cont [2/8] (short) (narrow) %v1211_v51, 8 }
 0x20e   : > { %v3035_v61 = vpop.f32.mrb[36].mxu1  ;;  %v3690_v0 = vpop.f32.mrb[100].mxu0 }
 0x20f   : > { %v1224_v2 = vpop.f32.mrb[37].mxu1  ;;  %v3692_v5 = vpop.f32.mrb[101].mxu0 }
 0x210   : > { %1786 = vxpose.xlu0.b32.cont [3/8] (short) (narrow) %v3023_v20, 8  ;;  %1818 = vxpose.xlu1.b32.cont [3/8] (short) (narrow) %v3031_v40, 8  ;;  %v3036_v7 = vpop.f32.mrb[38].mxu1  ;;  %v3694_v10 = vpop.f32.mrb[102].mxu0 }
 0x211   : > { %v1227_v13 = vpop.f32.mrb[39].mxu1  ;;  %v3698_v17 = vpop.f32.mrb[103].mxu0 }
 0x214   : > { %1787 = vxpose.xlu0.b32.cont [4/8] (short) (narrow) %v3024_v24, 8  ;;  %1819 = vxpose.xlu1.b32.cont [4/8] (short) (narrow) %v3032_v45, 8 }
 0x216   : > { %v3039_v26 = vpop.f32.mrb[40].mxu1  ;;  %v3702_v42 = vpop.f32.mrb[104].mxu0 }
 0x217   : > { %3969 = vst [vmem:[#allocation2_spill] sm:$0xff] %v3702_v42  ;;  %v1240_v51 = vpop.f32.mrb[41].mxu1  ;;  %v3704_v20 = vpop.f32.mrb[105].mxu0 }
 0x218   : > { %1788 = vxpose.xlu0.b32.cont [5/8] (short) (narrow) %v1192_v32, 8  ;;  %1820 = vxpose.xlu1.b32.cont [5/8] (short) (narrow) %v1224_v2, 8  ;;  %v3040_v40 = vpop.f32.mrb[42].mxu1  ;;  %v3706_v54 = vpop.f32.mrb[106].mxu0 }
 0x219   : > { %3970 = vst [vmem:[#allocation3_spill] sm:$0xff] %v3706_v54  ;;  %v1243_v59 = vpop.f32.mrb[43].mxu1  ;;  %v3710_v36 = vpop.f32.mrb[107].mxu0 }
 0x21c   : > { %1789 = vxpose.xlu0.b32.cont [6/8] (short) (narrow) %v1195_v35, 8  ;;  %1821 = vxpose.xlu1.b32.cont [6/8] (short) (narrow) %v1227_v13, 8 }
 0x21e   : > { %v3043_v45 = vpop.f32.mrb[44].mxu1  ;;  %v3714_v22 = vpop.f32.mrb[108].mxu0 }
 0x21f   : > { %3971 = vst [vmem:[#allocation4_spill] sm:$0xff] %v3714_v22  ;;  %v1256_v38 = vpop.f32.mrb[45].mxu1  ;;  %v3716_v32 = vpop.f32.mrb[109].mxu0 }
 0x220   : > { %3972 = vst [vmem:[#allocation5_spill] sm:$0xff] %v3716_v32  ;;  %1790 = vxpose.xlu0.b32.cont [7/8] (short) (narrow) %v3027_v30, 8  ;;  %1822 = vxpose.xlu1.b32.cont [7/8] (short) (narrow) %v3035_v61, 8  ;;  %v3044_v2 = vpop.f32.mrb[46].mxu1  ;;  %v3718_v27 = vpop.f32.mrb[110].mxu0 }
 0x221   : > { %3973 = vst [vmem:[#allocation6_spill] sm:$0xff] %v3718_v27  ;;  %v1259_v29 = vpop.f32.mrb[47].mxu1  ;;  %v3722_v16 = vpop.f32.mrb[111].mxu0 }
 0x222   : > { %3974 = vst [vmem:[#allocation7_spill] sm:$0xff] %v3722_v16 }
 0x224   : > { %1791 = vxpose.xlu0.b32.end [8/8] (short) (narrow) %v3028_v33, 8  ;;  %1823 = vxpose.xlu1.b32.end [8/8] (short) (narrow) %v3036_v7, 8 }
 0x226   : > { %v3726_v13 = vpop.f32.mrb[48].mxu1  ;;  %v3728_v24 = vpop.f32.mrb[112].mxu0 }
 0x227   : > { %3975 = vst [vmem:[#allocation8_spill] sm:$0xff] %v3728_v24  ;;  %v3730_v30 = vpop.f32.mrb[49].mxu1  ;;  %v3732_v61 = vpop.f32.mrb[113].mxu0 }
 0x228   : > { %3976 = vst [vmem:[#allocation9_spill] sm:$0xff] %v3732_v61  ;;  %1848 = vxpose.xlu0.b32.start [1/8] (short) (narrow) %v1240_v51, 8  ;;  %v3734_v19 = vpop.f32.mrb[50].mxu1  ;;  %v3736_v6 = vpop.f32.mrb[114].mxu0 }
 0x229   : > { %3977 = vst [vmem:[#allocation10_spill] sm:$0xff] %v3736_v6  ;;  %v3738_v14 = vpop.f32.mrb[51].mxu1  ;;  %v3742_v33 = vpop.f32.mrb[115].mxu0 }
 0x22a   : > { %3978 = vst [vmem:[#allocation11_spill] sm:$0xff] %v3742_v33 }
 0x22c   : > { %1849 = vxpose.xlu0.b32.cont [2/8] (short) (narrow) %v1243_v59, 8 }
 0x22e   : > { %v3746_v9 = vpop.f32.mrb[52].mxu1  ;;  %v3748_v60 = vpop.f32.mrb[116].mxu0 }
 0x22f   : > { %3979 = vst [vmem:[#allocation12_spill] sm:$0xff] %v3748_v60  ;;  %v3750_v51 = vpop.f32.mrb[53].mxu1  ;;  %v3752_v63 = vpop.f32.mrb[117].mxu0 }
 0x230   : > { %3980 = vst [vmem:[#allocation13_spill] sm:$0xff] %v3752_v63  ;;  %1850 = vxpose.xlu0.b32.cont [3/8] (short) (narrow) %v3039_v26, 8  ;;  %v3754_v49 = vpop.f32.mrb[54].mxu1  ;;  %v3756_v53 = vpop.f32.mrb[118].mxu0 }
 0x231   : > { %3981 = vst [vmem:[#allocation14_spill] sm:$0xff] %v3756_v53  ;;  %v1291_v35 = vpop.f32.mrb[55].mxu1  ;;  %v3760_v24 = vpop.f32.mrb[119].mxu0 }
 0x232   : > { %3982 = vst [vmem:[#allocation15_spill] sm:$0xff] %v3760_v24 }
 0x234   : > { %1851 = vxpose.xlu0.b32.cont [4/8] (short) (narrow) %v3040_v40, 8 }
 0x236   : > { %v3055_v7 = vpop.f32.mrb[56].mxu1  ;;  %v3135_v6 = vpop.f32.mrb[120].mxu0 }
 0x237   : > { %v1304_v61 = vpop.f32.mrb[57].mxu1  ;;  %v1657_v33 = vpop.f32.mrb[121].mxu0 }
 0x238   : > { %1852 = vxpose.xlu0.b32.cont [5/8] (short) (narrow) %v1256_v38, 8  ;;  %v3056_v26 = vpop.f32.mrb[58].mxu1  ;;  %v3136_v22 = vpop.f32.mrb[122].mxu0 }
 0x239   : > { %v1307_v27 = vpop.f32.mrb[59].mxu1  ;;  %v2062_v32 = vpack.c.bf16 %v3136_v22, %v3135_v6  ;;  %v1660_v16 = vpop.f32.mrb[123].mxu0 }
 0x23a   : > { %v2061_v42 = vpack.c.bf16 %v1660_v16, %v1657_v33 }
 0x23c   : > { %1853 = vxpose.xlu0.b32.cont [6/8] (short) (narrow) %v1259_v29, 8  ;;  %3226 = vmatpush3.bf16.msra.mxu0 %v2061_v42 }
 0x23d   : > { %3227 = vmatprep.subr.bf16.mxu0 %v3983_v39 }
 0x23e   : > { %v3059_v60 = vpop.f32.mrb[60].mxu1  ;;  %v3139_v63 = vpop.f32.mrb[124].mxu0 }
 0x23f   : > { %v1320_v53 = vpop.f32.mrb[61].mxu1  ;;  %v1673_v38 = vpop.f32.mrb[125].mxu0 }
 0x240   : > { %1854 = vxpose.xlu0.b32.cont [7/8] (short) (narrow) %v3043_v45, 8  ;;  %v3060_v59 = vpop.f32.mrb[62].mxu1  ;;  %3228 = vmatpush3.bf16.msra.mxu0 %v2062_v32  ;;  %v3140_v24 = vpop.f32.mrb[126].mxu0 }
 0x241   : > { %v1323_v40 = vpop.f32.mrb[63].mxu1  ;;  %3229 = vmatprep.subr.bf16.mxu0 %v3983_v39  ;;  %v2064_v6 = vpack.c.bf16 %v3140_v24, %v3139_v63  ;;  %v1676_v22 = vpop.f32.mrb[127].mxu0 }
 0x242   : > { %v2063_v16 = vpack.c.bf16 %v1676_v22, %v1673_v38 }
 0x244   : > { %1855 = vxpose.xlu0.b32.end [8/8] (short) (narrow) %v3044_v2, 8  ;;  %3230 = vmatpush3.bf16.msra.mxu0 %v2063_v16 }
 0x245   : > { %3231 = vmatprep.subr.bf16.mxu0 %v3983_v39 }
 0x248   : > { %v1704_v29 = vpop.trf.xlu0  ;;  %3232 = vmatpush3.bf16.msra.mxu0 %v2064_v6 }
 0x249   : > { %v1945_v42 = vsel %vm1944_vm2, %v1704_v29, -inf }
 0x24b   : > { %1946 = vmax.xlane.f32.xlu1 %v1945_v42 }
 0x259   : > { %v1736_v45 = vpop.trf.xlu1 }
 0x25a   : > { %v1948_v32 = vsel %vm1944_vm2, %v1736_v45, -inf }
 0x25b   : > { %1949 = vmax.xlane.f32.xlu1 %v1948_v32 }
 0x268   : > { %v1768_v33 = vpop.trf.xlu0 }
 0x269   : > { %v1951_v2 = vsel %vm1944_vm2, %v1768_v33, -inf }
 0x271   : > { %1952 = vmax.xlane.f32.xlu0 %v1951_v2 }
 0x288   : > { %v1800_v54 = vpop.trf.xlu0  ;;  %v1832_v24 = vpop.trf.xlu1 }
 0x289   : > { %v1954_v63 = vsel %vm1944_vm2, %v1800_v54, -inf }
 0x28a   : > { %1955 = vmax.xlane.f32.xlu1 %v1954_v63 }
 0x29e   : > { %1912 = vxpose.xlu0.b32.start [1/8] (short) (narrow) %v1304_v61, 8 }
 0x2a2   : > { %1913 = vxpose.xlu0.b32.cont [2/8] (short) (narrow) %v1307_v27, 8 }
 0x2a6   : > { %1914 = vxpose.xlu0.b32.cont [3/8] (short) (narrow) %v3055_v7, 8 }
 0x2aa   : > { %1915 = vxpose.xlu0.b32.cont [4/8] (short) (narrow) %v3056_v26, 8 }
 0x2ae   : > { %1916 = vxpose.xlu0.b32.cont [5/8] (short) (narrow) %v1320_v53, 8 }
 0x2b2   : > { %1917 = vxpose.xlu0.b32.cont [6/8] (short) (narrow) %v1323_v40, 8 }
 0x2b6   : > { %1918 = vxpose.xlu0.b32.cont [7/8] (short) (narrow) %v3059_v60, 8  ;;  %v1957_v60 = vsel %vm1944_vm2, %v1832_v24, -inf }
 0x2ba   : > { %1919 = vxpose.xlu0.b32.end [8/8] (short) (narrow) %v3060_v59, 8 }
 0x2bd   : > { %1880 = vxpose.xlu1.b32.start [1/8] (short) (narrow) %v3730_v30, 8 }
 0x2c1   : > { %1881 = vxpose.xlu1.b32.cont [2/8] (short) (narrow) %v3738_v14, 8 }
 0x2c5   : > { %1882 = vxpose.xlu1.b32.cont [3/8] (short) (narrow) %v3726_v13, 8 }
 0x2c9   : > { %1883 = vxpose.xlu1.b32.cont [4/8] (short) (narrow) %v3734_v19, 8  ;;  %v1864_v19 = vpop.trf.xlu0 }
 0x2ca   : > { %v1960_v13 = vsel %vm1944_vm2, %v1864_v19, -inf }
 0x2cd   : > { %1884 = vxpose.xlu1.b32.cont [5/8] (short) (narrow) %v3750_v51, 8 }
 0x2d1   : > { %1885 = vxpose.xlu1.b32.cont [6/8] (short) (narrow) %v1291_v35, 8 }
 0x2d5   : > { %1886 = vxpose.xlu1.b32.cont [7/8] (short) (narrow) %v3746_v9, 8 }
 0x2d8   : > { %v1947_v27 = vpop.xlane.xlu1 %1946 }
 0x2d9   : > { %v1969_v61 = vsub.f32 %v1704_v29, %v1947_v27  ;;  %1887 = vxpose.xlu1.b32.end [8/8] (short) (narrow) %v3754_v49, 8 }
 0x2db   : > { %v1977_v53 = vmul.f32 1.442695, %v1969_v61 }
 0x2dd   : > { %3302 = vpow2.f32 %v1977_v53 }
 0x2e7   : > { %v3303_v30 = vpop.eup %3302  ;;  %1958 = vmax.xlane.f32.xlu0 %v1957_v60 }
 0x2e8   : > { %v1993_v14 = vsel %vm1944_vm2, %v3303_v30, 0.0  ;;  %v1950_v49 = vpop.xlane.xlu1 %1949 }
 0x2e9   : > { %v1970_v9 = vsub.f32 %v1736_v45, %v1950_v49 }
 0x2eb   : > { %1994 = vadd.xlane.f32.xlu0 %v1993_v14  ;;  %v1979_v7 = vmul.f32 1.442695, %v1970_v9 }
 0x2ed   : > { %3304 = vpow2.f32 %v1979_v7  ;;  %v3985_v7 = vpack.c.bf16 %v3609_v47, %v3605_v44 }
 0x2f7   : > { %v3305_v42 = vpop.eup %3304 }
 0x2f8   : > { %v1996_v45 = vsel %vm1944_vm2, %v3305_v42, 0.0 }
 0x2fe   : > { %v1953_v35 = vpop.xlane.xlu0 %1952 }
 0x2ff   : > { %v1971_v51 = vsub.f32 %v1768_v33, %v1953_v35  ;;  %v3984_v35 = vpack.c.bf16 %v3613_v52, %v3607_v46  ;;  %v3987_v46 = vpack.c.bf16 %v3622_v58, %v3618_v55 }
 0x300   : > { %1961 = vmax.xlane.f32.xlu1 %v1960_v13 }
 0x301   : > { %v1981_v26 = vmul.f32 1.442695, %v1971_v51 }
 0x303   : > { %3306 = vpow2.f32 %v1981_v26 }
 0x30d   : > { %v3788_v32 = vpop.eup %3306 }
 0x317   : > { %v1956_v59 = vpop.xlane.xlu1 %1955 }
 0x318   : > { %v1972_v40 = vsub.f32 %v1800_v54, %v1956_v59  ;;  %v1999_v54 = vsel %vm1944_vm2, %v3788_v32, 0.0  ;;  %v3986_v59 = vpack.c.bf16 %v3626_v62, %v3620_v57 }
 0x31a   : > { %v1983_v38 = vmul.f32 1.442695, %v1972_v40 }
 0x31c   : > { %3308 = vpow2.f32 %v1983_v38 }
 0x31e   : > { %v1928_v22 = vpop.trf.xlu0 }
 0x31f   : > { %v1966_v29 = vsel %vm1944_vm2, %v1928_v22, -inf }
 0x326   : > { %v3792_v33 = vpop.eup %3308 }
 0x327   : > { %v2002_v2 = vsel %vm1944_vm2, %v3792_v33, 0.0 }
 0x33d   : > { %v1896_v6 = vpop.trf.xlu1 }
 0x33e   : > { %v1963_v16 = vsel %vm1944_vm2, %v1896_v6, -inf }
 0x33f   : > { %1964 = vmax.xlane.f32.xlu0 %v1963_v16 }
 0x343   : > { %1967 = vmax.xlane.f32.xlu0 %v1966_v29 }
 0x347   : > { %1997 = vadd.xlane.f32.xlu0 %v1996_v45 }
 0x34b   : > { %2000 = vadd.xlane.f32.xlu0 %v1999_v54 }
 0x34f   : > { %2003 = vadd.xlane.f32.xlu0 %v2002_v2  ;;  %v3988_v2 = vpack.c.bf16 %v3638_v8, %v3632_v3  ;;  %v3991_v8 = vpack.c.bf16 %v3646_v15, %v3642_v11 }
 0x374   : > { %v1959_v63 = vpop.xlane.xlu0 %1958 }
 0x375   : > { %v1973_v27 = vsub.f32 %v1832_v24, %v1959_v63  ;;  %v3989_v63 = vpack.c.bf16 %v3634_v4, %v3630_v1  ;;  %v3992_v1 = vpack.c.bf16 %v3662_v28, %v3656_v23  ;;  %v3993_v4 = vpack.c.bf16 %v3658_v25, %v3654_v21 }
 0x376   : > { %v3996_v21 = vpack.c.bf16 %v3686_v56, %v3680_v43  ;;  %v3997_v25 = vpack.c.bf16 %v3682_v48, %v3678_v41  ;;  %v3998_v28 = vpack.c.bf16 %v3698_v17, %v3692_v5  ;;  %v4000_v43 = vpack.c.bf16 %v3710_v36, %v3704_v20  ;;  %v4001_v48 = vld [vmem:[#allocation3_spill] sm:$0xff]  ;;  %v4002_v56 = vld [vmem:[#allocation2_spill] sm:$0xff]  ;;  %v4008_v20 = vld [vmem:[#allocation4_spill] sm:$0xff] }
 0x377   : > { %v1985_v61 = vmul.f32 1.442695, %v1973_v27  ;;  %v3990_v27 = vpack.c.bf16 %v3650_v18, %v3644_v12  ;;  %v3994_v12 = vpack.c.bf16 %v3674_v37, %v3668_v50  ;;  %v3995_v18 = vpack.c.bf16 %v3670_v34, %v3666_v31  ;;  %v4004_v5 = vld [vmem:[#allocation7_spill] sm:$0xff]  ;;  %v4007_v36 = vld [vmem:[#allocation6_spill] sm:$0xff] }
 0x378   : > { %v1995_v53 = vpop.xlane.xlu0 %1994  ;;  %v3999_v31 = vpack.c.bf16 %v3694_v10, %v3690_v0  ;;  %v4003_v0 = vpack.c.bf16 %v4001_v48, %v4002_v56  ;;  %v4005_v10 = vld [vmem:[#allocation5_spill] sm:$0xff] }
 0x379   : > { %3310 = vpow2.f32 %v1985_v61  ;;  %v4006_v17 = vpack.c.bf16 %v4004_v5, %v4005_v10 }
 0x37a   : > { %3312 = vrcp.f32 %v1995_v53 }
 0x383   : > { %v3796_v60 = vpop.eup %3310 }
 0x384   : > { %v3313_v14 = vpop.eup %3312  ;;  %v2005_v13 = vsel %vm1944_vm2, %v3796_v60, 0.0 }
 0x385   : > { %v2025_v49 = vmul.f32 %v3313_v14, %v3303_v30  ;;  %2006 = vadd.xlane.f32.xlu1 %v2005_v13 }
 0x387   : > { %v2065_v9 = vpack.c.bf16 %v2025_v49, %v2025_v49  ;;  %v4010_v49 = vld [vmem:[#allocation11_spill] sm:$0xff] }
 0x389   : > { %3150 = vmatmul.mubr.msk.bf16.vlgmr.msra.gmra.mrb[64].mxu1 %vm1944_vm2, %v2065_v9  ;;  %v4011_v9 = vld [vmem:[#allocation9_spill] sm:$0xff] }
 0x38a   : > { %3154 = vmatpush3.bf16.msra.mxu1 %v3984_v35  ;;  %3161 = vmatprep.mubr.msk.bf16.mxu1 %vm3359_vm3, %v3983_v39  ;;  %v4012_v35 = vpack.c.bf16 %v4010_v49, %v4011_v9 }
 0x38b   : > { %3155 = vmatprep.subr.bf16.mxu1 %v3983_v39 }
 0x38d   : > { %v1962_v24 = vpop.xlane.xlu1 %1961 }
 0x38e   : > { %3156 = vmatpush3.bf16.msra.mxu1 %v3985_v7  ;;  %v1974_v51 = vsub.f32 %v1864_v19, %v1962_v24  ;;  %v4013_v24 = vld [vmem:[#allocation10_spill] sm:$0xff]  ;;  %v4014_v7 = vld [vmem:[#allocation8_spill] sm:$0xff] }
 0x38f   : > { %3157 = vmatprep.subr.bf16.mxu1 %v3983_v39 }
 0x390   : > { %v1987_v30 = vmul.f32 1.442695, %v1974_v51  ;;  %v4015_v51 = vpack.c.bf16 %v4013_v24, %v4014_v7 }
 0x392   : > { %3314 = vpow2.f32 %v1987_v30  ;;  %3158 = vmatpush3.bf16.msra.mxu1 %v3986_v59  ;;  %v4016_v30 = vld [vmem:[#allocation15_spill] sm:$0xff]  ;;  %v4017_v59 = vld [vmem:[#allocation13_spill] sm:$0xff] }
 0x393   : > { %3159 = vmatprep.subr.bf16.mxu1 %v3983_v39 }
 0x396   : > { %3160 = vmatpush3.bf16.msra.mxu1 %v3987_v46  ;;  %v4018_v46 = vpack.c.bf16 %v4016_v30, %v4017_v59 }
 0x397   : > { %3165 = vmatprep.subr.bf16.mxu1 %v3983_v39 }
 0x39c   : > { %v3819_v52 = vpop.eup %3314 }
 0x39d   : > { %v2008_v44 = vsel %vm1944_vm2, %v3819_v52, 0.0 }
 0x39e   : > { %2009 = vadd.xlane.f32.xlu0 %v2008_v44  ;;  %v4020_v44 = vld [vmem:[#allocation12_spill] sm:$0xff] }
 0x3cc   : > { %v1965_v47 = vpop.xlane.xlu0 %1964 }
 0x3cd   : > { %v1975_v19 = vsub.f32 %v1896_v6, %v1965_v47 }
 0x3cf   : > { %v1989_v26 = vmul.f32 1.442695, %v1975_v19 }
 0x3d0   : > { %v1968_v40 = vpop.xlane.xlu0 %1967 }
 0x3d1   : > { %3316 = vpow2.f32 %v1989_v26  ;;  %v1976_v57 = vsub.f32 %v1928_v22, %v1968_v40 }
 0x3d3   : > { %v1991_v62 = vmul.f32 1.442695, %v1976_v57 }
 0x3d4   : > { %v1998_v38 = vpop.xlane.xlu0 %1997 }
 0x3d5   : > { %3318 = vpow2.f32 %v1991_v62 }
 0x3d6   : > { %3320 = vrcp.f32 %v1998_v38 }
 0x3d8   : > { %v2001_v29 = vpop.xlane.xlu0 %2000 }
 0x3d9   : > { %3322 = vrcp.f32 %v2001_v29 }
 0x3db   : > { %v3823_v55 = vpop.eup %3316 }
 0x3dc   : > { %v2011_v58 = vsel %vm1944_vm2, %v3823_v55, 0.0  ;;  %v2004_v3 = vpop.xlane.xlu0 %2003 }
 0x3dd   : > { %2012 = vadd.xlane.f32.xlu1 %v2011_v58  ;;  %3324 = vrcp.f32 %v2004_v3 }
 0x3df   : > { %v3827_v16 = vpop.eup %3318 }
 0x3e0   : > { %v3321_v45 = vpop.eup %3320  ;;  %v2014_v6 = vsel %vm1944_vm2, %v3827_v16, 0.0 }
 0x3e1   : > { %v2026_v54 = vmul.f32 %v3321_v45, %v3305_v42  ;;  %2015 = vadd.xlane.f32.xlu0 %v2014_v6 }
 0x3e3   : > { %v2066_v22 = vpack.c.bf16 %v2026_v54, %v2026_v54  ;;  %v3323_v42 = vpop.eup %3322 }
 0x3e4   : > { %v2027_v61 = vmul.f32 %v3323_v42, %v3788_v32 }
 0x3e5   : > { %3162 = vmatmul.mubr.msk.bf16.vlgmr.msra.gmra.mrb[68].mxu1 %vm1944_vm2, %v2066_v22 }
 0x3e6   : > { %3166 = vmatpush3.bf16.msra.mxu1 %v3988_v2  ;;  %3173 = vmatprep.mubr.msk.bf16.mxu1 %vm3359_vm3, %v3983_v39  ;;  %v2067_v53 = vpack.c.bf16 %v2027_v61, %v2027_v61 }
 0x3e7   : > { %3167 = vmatprep.subr.bf16.mxu1 %v3983_v39  ;;  %v3325_v11 = vpop.eup %3324 }
 0x3e8   : > { %v2028_v15 = vmul.f32 %v3325_v11, %v3792_v33  ;;  %v4009_v33 = vpack.c.bf16 %v4007_v36, %v4008_v20 }
 0x3ea   : > { %3168 = vmatpush3.bf16.msra.mxu1 %v3989_v63  ;;  %v2068_v23 = vpack.c.bf16 %v2028_v15, %v2028_v15 }
 0x3eb   : > { %3169 = vmatprep.subr.bf16.mxu1 %v3983_v39 }
 0x3ee   : > { %3170 = vmatpush3.bf16.msra.mxu1 %v3990_v27  ;;  %v2749_v27 = vld [vmem:[%s3951_s5] ss:$0 sm:$0xff] }
 0x3ef   : > { %3171 = vmatprep.subr.bf16.mxu1 %v3983_v39 }
 0x3f2   : > { %3172 = vmatpush3.bf16.msra.mxu1 %v3991_v8 }
 0x3f3   : > { %3177 = vmatprep.subr.bf16.mxu1 %v3983_v39 }
 0x3f5   : > { %3174 = vmatmul.mubr.msk.bf16.vlgmr.msra.gmra.mrb[72].mxu1 %vm1944_vm2, %v2067_v53 }
 0x3f6   : > { %3178 = vmatpush3.bf16.msra.mxu1 %v3992_v1  ;;  %3185 = vmatprep.mubr.msk.bf16.mxu1 %vm3359_vm3, %v3983_v39 }
 0x3f7   : > { %3179 = vmatprep.subr.bf16.mxu1 %v3983_v39 }
 0x3fa   : > { %3180 = vmatpush3.bf16.msra.mxu1 %v3993_v4 }
 0x3fb   : > { %3181 = vmatprep.subr.bf16.mxu1 %v3983_v39 }
 0x3fe   : > { %3182 = vmatpush3.bf16.msra.mxu1 %v3994_v12 }
 0x3ff   : > { %3183 = vmatprep.subr.bf16.mxu1 %v3983_v39 }
 0x402   : > { %3184 = vmatpush3.bf16.msra.mxu1 %v3995_v18 }
 0x403   : > { %3189 = vmatprep.subr.bf16.mxu1 %v3983_v39 }
 0x405   : > { %3186 = vmatmul.mubr.msk.bf16.vlgmr.msra.gmra.mrb[76].mxu1 %vm1944_vm2, %v2068_v23 }
 0x406   : > { %3190 = vmatpush3.bf16.msra.mxu1 %v3996_v21  ;;  %3197 = vmatprep.mubr.msk.bf16.mxu1 %vm3359_vm3, %v3983_v39 }
 0x407   : > { %3191 = vmatprep.subr.bf16.mxu1 %v3983_v39 }
 0x40a   : > { %3192 = vmatpush3.bf16.msra.mxu1 %v3997_v25 }
 0x40b   : > { %3193 = vmatprep.subr.bf16.mxu1 %v3983_v39 }
 0x40e   : > { %3194 = vmatpush3.bf16.msra.mxu1 %v3998_v28 }
 0x40f   : > { %3195 = vmatprep.subr.bf16.mxu1 %v3983_v39 }
 0x412   : > { %3196 = vmatpush3.bf16.msra.mxu1 %v3999_v31  ;;  %v2007_v50 = vpop.xlane.xlu1 %2006  ;;  %v3360_v31 = vmov 1983009808  }
 0x413   : > { %3326 = vrcp.f32 %v2007_v50  ;;  %3201 = vmatprep.subr.bf16.mxu1 %v3983_v39  ;;  %v2435_v50 = vunpack.c.l.s4 %v3360_v31 }
 0x41d   : > { %v3327_v34 = vpop.eup %3326 }
 0x41e   : > { %v2029_v37 = vmul.f32 %v3327_v34, %v3796_v60  ;;  %v2437_v34 = vlaneseq }
 0x420   : > { %v2069_v41 = vpack.c.bf16 %v2029_v37, %v2029_v37  ;;  %v2436_v37 = vunpack.c.0.s8 %v2435_v50 }
 0x422   : > { %3198 = vmatmul.mubr.msk.bf16.vlgmr.msra.gmra.mrb[80].mxu1 %vm1944_vm2, %v2069_v41  ;;  %v2438_v41 = vshrl.u32 %v2437_v34, 7 }
 0x423   : > { %3202 = vmatpush3.bf16.msra.mxu1 %v4000_v43  ;;  %3209 = vmatprep.mubr.msk.bf16.mxu1 %vm3359_vm3, %v3983_v39 }
 0x424   : > { %3203 = vmatprep.subr.bf16.mxu1 %v3983_v39  ;;  %v2439_v48 = vsub.s32 %v2436_v37, %v2438_v41 }
 0x427   : > { %3204 = vmatpush3.bf16.msra.mxu1 %v4003_v0 }
 0x428   : > { %3205 = vmatprep.subr.bf16.mxu1 %v3983_v39 }
 0x42b   : > { %3206 = vmatpush3.bf16.msra.mxu1 %v4006_v17  ;;  %v2010_v32 = vpop.xlane.xlu0 %2009 }
 0x42c   : > { %3328 = vrcp.f32 %v2010_v32  ;;  %3207 = vmatprep.subr.bf16.mxu1 %v3983_v39 }
 0x42f   : > { %3208 = vmatpush3.bf16.msra.mxu1 %v4009_v33 }
 0x430   : > { %3213 = vmatprep.subr.bf16.mxu1 %v3983_v39 }
 0x436   : > { %v3329_v60 = vpop.eup %3328 }
 0x437   : > { %v2030_v14 = vmul.f32 %v3329_v60, %v3819_v52  ;;  %v4019_v52 = vld [vmem:[#allocation14_spill] sm:$0xff] }
 0x438   : > { %v4021_v47 = vpack.c.bf16 %v4019_v52, %v4020_v44 }
 0x439   : > { %v2070_v13 = vpack.c.bf16 %v2030_v14, %v2030_v14 }
 0x43b   : > { %3210 = vmatmul.mubr.msk.bf16.vlgmr.msra.gmra.mrb[84].mxu1 %vm1944_vm2, %v2070_v13 }
 0x43c   : > { %3214 = vmatpush3.bf16.msra.mxu1 %v4012_v35  ;;  %3221 = vmatprep.mubr.msk.bf16.mxu1 %vm3359_vm3, %v3983_v39 }
 0x43d   : > { %3215 = vmatprep.subr.bf16.mxu1 %v3983_v39 }
 0x440   : > { %3216 = vmatpush3.bf16.msra.mxu1 %v4015_v51 }
 0x441   : > { %3217 = vmatprep.subr.bf16.mxu1 %v3983_v39 }
 0x444   : > { %3218 = vmatpush3.bf16.msra.mxu1 %v4018_v46 }
 0x445   : > { %3219 = vmatprep.subr.bf16.mxu1 %v3983_v39 }
 0x448   : > { %3220 = vmatpush3.bf16.msra.mxu1 %v4021_v47 }
 0x45c   : > { %v2117_v19 = vpop.f32.mrb[64].mxu1 }
 0x45d   : > { %v3151_v26 = vpop.f32.mrb[65].mxu1  ;;  %v2118_v61 = vadd.f32 %v2749_v27, %v2117_v19 }
 0x45e   : > { %v2120_v40 = vpop.f32.mrb[66].mxu1 }
 0x45f   : > { %v3152_v57 = vpop.f32.mrb[67].mxu1 }
 0x46a   : > { %v2013_v62 = vpop.xlane.xlu1 %2012 }
 0x46b   : > { %3330 = vrcp.f32 %v2013_v62 }
 0x46e   : > { %v2016_v38 = vpop.xlane.xlu0 %2015 }
 0x46f   : > { %3332 = vrcp.f32 %v2016_v38 }
 0x470   : > { %3334 = vtanh.f32 %v2118_v61 }
 0x475   : > { %v3331_v58 = vpop.eup %3330 }
 0x476   : > { %v2031_v29 = vmul.f32 %v3331_v58, %v3823_v55 }
 0x478   : > { %v2071_v45 = vpack.c.bf16 %v2031_v29, %v2031_v29  ;;  %v3361_v29 = vmov 1934713408  }
 0x479   : > { %v3333_v6 = vpop.eup %3332 }
 0x47a   : > { %v2032_v54 = vmul.f32 %v3333_v6, %v3827_v16  ;;  %3222 = vmatmul.mubr.msk.bf16.vlgmr.msra.gmra.mrb[88].mxu1 %vm1944_vm2, %v2071_v45  ;;  %v3335_v1 = vpop.eup %3334  ;;  %v2499_v45 = vunpack.c.l.s4 %v3361_v29 }
 0x47c   : > { %v2072_v39 = vpack.c.bf16 %v2032_v54, %v2032_v54 }
 0x47e   : > { %3234 = vmatmul.mubr.msk.bf16.vlgmr.msra.gmra.mrb[128].mxu0 %vm1944_vm2, %v2072_v39 }
 0x4b8   : > { %v2160_v22 = vpop.f32.mrb[68].mxu1 }
 0x4b9   : > { %v3163_v2 = vpop.f32.mrb[69].mxu1  ;;  %v2161_v11 = vadd.f32 %v2749_v27, %v2160_v22 }
 0x4ba   : > { %v2163_v63 = vpop.f32.mrb[70].mxu1  ;;  %v2500_v2 = vunpack.c.0.s8 %v2499_v45 }
 0x4bb   : > { %v3164_v42 = vpop.f32.mrb[71].mxu1 }
 0x4c8   : > { %v2203_v3 = vpop.f32.mrb[72].mxu1 }
 0x4c9   : > { %v2204_v55 = vadd.f32 %v2749_v27, %v2203_v3  ;;  %v3175_v8 = vpop.f32.mrb[73].mxu1 }
 0x4ca   : > { %v2206_v53 = vpop.f32.mrb[74].mxu1 }
 0x4cb   : > { %3336 = vtanh.f32 %v2204_v55  ;;  %v3176_v16 = vpop.f32.mrb[75].mxu1  ;;  %v2503_v55 = vsub.s32 %v2500_v2, %v2438_v41 }
 0x4cc   : > { %3338 = vtanh.f32 %v2161_v11 }
 0x4d5   : > { %v3337_v4 = vpop.eup %3336 }
 0x4d6   : > { %v2433_v12 = vcombine.high %v3335_v1, %v3337_v4  ;;  %v2432_v15 = vcombine.low %v3335_v1, %v3337_v4  ;;  %v3339_v43 = vpop.eup %3338 }
 0x4d8   : > { %v2246_v18 = vpop.f32.mrb[76].mxu1  ;;  %v2447_v10 = vrot.slane %v2433_v12, %v2439_v48  ;;  %v2440_v32 = vrot.slane %v2432_v15, %v2439_v48 }
 0x4d9   : > { %v2247_v23 = vadd.f32 %v2749_v27, %v2246_v18  ;;  %v3187_v21 = vpop.f32.mrb[77].mxu1 }
 0x4da   : > { %v2249_v25 = vpop.f32.mrb[78].mxu1 }
 0x4db   : > { %3340 = vtanh.f32 %v2247_v23  ;;  %v3188_v28 = vpop.f32.mrb[79].mxu1 }
 0x4e5   : > { %v3341_v56 = vpop.eup %3340 }
 0x4e6   : > { %v2449_v0 = vcombine.high %v3339_v43, %v3341_v56  ;;  %v2448_v5 = vcombine.low %v3339_v43, %v3341_v56 }
 0x4e8   : > { %v2463_v17 = vrot.slane %v2449_v0, %v2439_v48  ;;  %v2456_v36 = vrot.slane %v2448_v5, %v2439_v48 }
 0x4ea   : > { %v2512_v20 = vcombine.low %v2447_v10, %v2463_v17  ;;  %v2496_v33 = vcombine.low %v2440_v32, %v2456_v36  ;;  %v2513_v60 = vcombine.high %v2447_v10, %v2463_v17  ;;  %v2497_v14 = vcombine.high %v2440_v32, %v2456_v36 }
 0x4ec   : > { %v2520_v15 = vrot.slane %v2512_v20, %v2503_v55  ;;  %v2504_v18 = vrot.slane %v2496_v33, %v2503_v55  ;;  %v2527_v23 = vrot.slane %v2513_v60, %v2503_v55  ;;  %v2511_v21 = vrot.slane %v2497_v14, %v2503_v55 }
 0x4f5   : > { %v2289_v13 = vpop.f32.mrb[80].mxu1 }
 0x4f6   : > { %v3199_v49 = vpop.f32.mrb[81].mxu1  ;;  %v2290_v59 = vadd.f32 %v2749_v27, %v2289_v13 }
 0x4f7   : > { %v2292_v9 = vpop.f32.mrb[82].mxu1 }
 0x4f8   : > { %v3200_v35 = vpop.f32.mrb[83].mxu1  ;;  %3342 = vtanh.f32 %v2290_v59 }
 0x502   : > { %v3343_v6 = vpop.eup %3342 }
 0x50e   : > { %v2332_v24 = vpop.f32.mrb[84].mxu1 }
 0x50f   : > { %v3211_v7 = vpop.f32.mrb[85].mxu1  ;;  %v2333_v47 = vadd.f32 %v2749_v27, %v2332_v24 }
 0x510   : > { %v2335_v51 = vpop.f32.mrb[86].mxu1 }
 0x511   : > { %v3212_v30 = vpop.f32.mrb[87].mxu1 }
 0x54d   : > { %v2375_v46 = vpop.f32.mrb[88].mxu1 }
 0x54e   : > { %v2376_v52 = vadd.f32 %v2749_v27, %v2375_v46  ;;  %v3223_v44 = vpop.f32.mrb[89].mxu1 }
 0x54f   : > { %v2378_v19 = vpop.f32.mrb[90].mxu1 }
 0x550   : > { %3344 = vtanh.f32 %v2376_v52  ;;  %v3224_v26 = vpop.f32.mrb[91].mxu1 }
 0x551   : > { %v2418_v40 = vpop.f32.mrb[128].mxu0  ;;  %3346 = vtanh.f32 %v2333_v47 }
 0x552   : > { %v2419_v57 = vadd.f32 %v2749_v27, %v2418_v40  ;;  %v3235_v62 = vpop.f32.mrb[129].mxu0 }
 0x553   : > { %v2421_v38 = vpop.f32.mrb[130].mxu0 }
 0x554   : > { %3348 = vtanh.f32 %v2419_v57  ;;  %v3236_v58 = vpop.f32.mrb[131].mxu0 }
 0x55a   : > { %v3345_v54 = vpop.eup %3344 }
 0x55b   : > { %v2465_v39 = vcombine.high %v3343_v6, %v3345_v54  ;;  %v2464_v22 = vcombine.low %v3343_v6, %v3345_v54  ;;  %v3347_v63 = vpop.eup %3346 }
 0x55d   : > { %v2479_v8 = vrot.slane %v2465_v39, %v2439_v48  ;;  %v2472_v27 = vrot.slane %v2464_v22, %v2439_v48 }
 0x55e   : > { %v3349_v42 = vpop.eup %3348 }
 0x55f   : > { %v2481_v61 = vcombine.high %v3347_v63, %v3349_v42  ;;  %v2480_v3 = vcombine.low %v3347_v63, %v3349_v42 }
 0x561   : > { %v2495_v53 = vrot.slane %v2481_v61, %v2439_v48  ;;  %v2488_v16 = vrot.slane %v2480_v3, %v2439_v48 }
 0x563   : > { %v2544_v1 = vcombine.low %v2479_v8, %v2495_v53  ;;  %v2528_v4 = vcombine.low %v2472_v27, %v2488_v16  ;;  %v2545_v11 = vcombine.high %v2479_v8, %v2495_v53  ;;  %v2529_v12 = vcombine.high %v2472_v27, %v2488_v16 }
 0x565   : > { %v2552_v25 = vrot.slane %v2544_v1, %v2503_v55  ;;  %v2536_v28 = vrot.slane %v2528_v4, %v2503_v55  ;;  %v2559_v31 = vrot.slane %v2545_v11, %v2503_v55  ;;  %v2543_v50 = vrot.slane %v2529_v12, %v2503_v55 }
 0x567   : > { %v2565_v34 = vcombine.high %v2520_v15, %v2552_v25  ;;  %v2561_v37 = vcombine.high %v2504_v18, %v2536_v28  ;;  %v2567_v41 = vcombine.high %v2527_v23, %v2559_v31  ;;  %v2562_v43 = vcombine.low %v2511_v21, %v2543_v50 }
 0x568   : > { %v2566_v56 = vcombine.low %v2527_v23, %v2559_v31  ;;  %v2563_v48 = vcombine.high %v2511_v21, %v2543_v50  ;;  %v2564_v0 = vcombine.low %v2520_v15, %v2552_v25  ;;  %v2560_v5 = vcombine.low %v2504_v18, %v2536_v28 }
 0x569   : > { %2581 = vrot.lane.b32.xlu0 %v2565_v34, %s3362_s20  ;;  %2569 = vrot.lane.b32.xlu1 %v2561_v37, %s3362_s20 }
 0x56d   : > { %2589 = vrot.lane.b32.xlu0 %v2567_v41, %s3363_s23  ;;  %2573 = vrot.lane.b32.xlu1 %v2562_v43, %s3364_s24 }
 0x571   : > { %2585 = vrot.lane.b32.xlu1 %v2566_v56, %s3364_s24 }
 0x575   : > { %2577 = vrot.lane.b32.xlu1 %v2563_v48, %s3363_s23 }
 0x5db   : > { %v2570_v10 = vpop.permute.xlu1 %2569  ;;  %v2582_v17 = vpop.permute.xlu0 %2581 }
 0x5dc   : > { %v2597_v36 = vsel %vm2592_vm4, %v2564_v0, %v2582_v17  ;;  %v2593_v13 = vsel %vm2592_vm4, %v2560_v5, %v2570_v10 }
 0x5df   : > { %v2574_v32 = vpop.permute.xlu1 %2573  ;;  %v2590_v33 = vpop.permute.xlu0 %2589 }
 0x5e0   : > { %v2594_v49 = vsel %vm1944_vm2, %v2593_v13, %v2574_v32 }
 0x5e3   : > { %v2586_v20 = vpop.permute.xlu1 %2585 }
 0x5e4   : > { %v2598_v60 = vsel %vm1944_vm2, %v2597_v36, %v2586_v20 }
 0x5e5   : > { %v2599_v14 = vsel %vm2595_vm5, %v2598_v60, %v2590_v33 }
 0x5e6   : > { %2601 = vst [vmem:[%s256_s28 + $0x8] sm:$0xff] %v2599_v14 }
 0x5e7   : > { %v2578_v9 = vpop.permute.xlu1 %2577 }
 0x5e8   : > { %v2596_v35 = vsel %vm2595_vm5, %v2594_v49, %v2578_v9 }
 0x5e9   : > { %2600 = vst [vmem:[%s256_s28] sm:$0xff] %v2596_v35 }
 0x5ea PF: > { %s16_s21 = sadd.s32 1, %s3356_s21  }
 0x5eb   : > { %p13_p5 = scmp.ge.s32.totalorder %s16_s21, 4  }
 0x5ed   :  { %15 = sbr.rel (!%p13_p5) target bundleno = 1 (0x1), region = 74 }

</bundles_post_ra>
